<compile_context>
chip_gen: v5e
topology: v5e:2x2
jax: 0.10.0
libtpu: 0.0.40
codegen_flags: <defaults>
</compile_context>

<pallas_src>
import jax
import jax.numpy as jnp
from jax import lax
from jax.experimental import pallas as pl
from jax.experimental.pallas import tpu as pltpu
import numpy as np


# ----------------------------- Pallas kernel --------------------------------
def bilstm_avg_mlp_kernel(x_f_ref, x_b_ref, lens_ref, inv_len_ref,
                          wih_f_ref, whh_f_ref, b_f_ref,
                          wih_b_ref, whh_b_ref, b_b_ref,
                          w1f_ref, w1b_ref, b1_ref, w2_ref, b2_ref,
                          out_ref,
                          pf_ref, pb_ref,
                          hf_ref, cf_ref, sf_ref,
                          hb_ref, cb_ref, sb_ref):
    step_idx = pl.program_id(0)
    n_steps = pl.num_programs(0)

    TB, four_h = pf_ref.shape            # (time_block * B_pad, 4H)
    B, H = hf_ref.shape                  # (B_pad, H)
    Tt = TB // B
    f32 = jnp.float32

    # ---- init carried state on the first time block ----
    @pl.when(step_idx == 0)
    def _init():
        z = jnp.zeros((B, H), f32)
        hf_ref[...] = z; cf_ref[...] = z; sf_ref[...] = z
        hb_ref[...] = z; cb_ref[...] = z; sb_ref[...] = z
        out_ref[...] = jnp.zeros(out_ref.shape, out_ref.dtype)

    # ---- hoisted input projection: one big MXU matmul per direction/block ----
    pf_ref[...] = (jnp.dot(x_f_ref[...], wih_f_ref[...],
                           preferred_element_type=f32) + b_f_ref[...])
    pb_ref[...] = (jnp.dot(x_b_ref[...], wih_b_ref[...],
                           preferred_element_type=f32) + b_b_ref[...])

    whh_f = whh_f_ref[...]
    whh_b = whh_b_ref[...]
    lens = lens_ref[...]                                  # (B, 1) int32

    # Lane mask selecting the cell-candidate gate (PyTorch gate order i, f, g, o):
    # lets us apply sigmoid / tanh at full vreg width instead of narrow gate slices.
    lane = lax.broadcasted_iota(jnp.int32, (B, four_h), 1)
    g_sel = (lane >= 2 * H) & (lane < 3 * H)

    def cell(pre, h, c, whh):
        gates = pre + jnp.dot(h.astype(whh.dtype), whh,
                              preferred_element_type=f32)          # (B, 4H) f32
        act = jnp.where(g_sel, jnp.tanh(gates), jax.nn.sigmoid(gates))
        i_g = act[:, 0:H]
        f_g = act[:, H:2 * H]
        g_g = act[:, 2 * H:3 * H]
        o_g = act[:, 3 * H:4 * H]
        c_new = f_g * c + i_g * g_g
        h_new = o_g * jnp.tanh(c_new)
        return h_new, c_new

    t0_f = step_idx * Tt                     # global time of local step 0 (forward)
    t0_b = (n_steps - 1 - step_idx) * Tt     # global time of local step 0 (backward block)

    # ---- fused forward + backward recurrence over this time block ----
    def body(k, carry):
        h_f, c_f, s_f, h_b, c_b, s_b = carry

        # forward direction: local step k  (ascending global time)
        rf = pl.multiple_of(k * B, B)
        hf_new, cf_new = cell(pf_ref[pl.ds(rf, B), :], h_f, c_f, whh_f)
        m_f = (t0_f + k) < lens                                    # (B, 1) bool
        h_f = jnp.where(m_f, hf_new, h_f)
        c_f = jnp.where(m_f, cf_new, c_f)
        s_f = s_f + jnp.where(m_f, hf_new, 0.0)

        # backward direction: local step Tt-1-k  (descending global time)
        kk = Tt - 1 - k
        rb = pl.multiple_of(kk * B, B)
        hb_new, cb_new = cell(pb_ref[pl.ds(rb, B), :], h_b, c_b, whh_b)
        m_b = (t0_b + kk) < lens
        # state held at zero while t >= len so each sequence starts from h0 = c0 = 0
        h_b = jnp.where(m_b, hb_new, 0.0)
        c_b = jnp.where(m_b, cb_new, 0.0)
        s_b = s_b + jnp.where(m_b, hb_new, 0.0)
        return h_f, c_f, s_f, h_b, c_b, s_b

    carry0 = (hf_ref[...], cf_ref[...], sf_ref[...],
              hb_ref[...], cb_ref[...], sb_ref[...])
    h_f, c_f, s_f, h_b, c_b, s_b = lax.fori_loop(0, Tt, body, carry0, unroll=True)
    hf_ref[...] = h_f; cf_ref[...] = c_f; sf_ref[...] = s_f
    hb_ref[...] = h_b; cb_ref[...] = c_b; sb_ref[...] = s_b

    # ---- finalize: masked time-average + 2-layer MLP, lane-dense output ----
    @pl.when(step_idx == n_steps - 1)
    def _finalize():
        inv = inv_len_ref[...]                                     # (B, 1) f32, exact
        avg_f = (sf_ref[...] * inv).astype(w1f_ref.dtype)
        avg_b = (sb_ref[...] * inv).astype(w1b_ref.dtype)
        pre = (jnp.dot(avg_f, w1f_ref[...], preferred_element_type=f32)
               + jnp.dot(avg_b, w1b_ref[...], preferred_element_type=f32)
               + b1_ref[...])
        hid = jnp.maximum(pre, 0.0).astype(w2_ref.dtype)
        out_ref[...] = (jnp.dot(hid, w2_ref[...], preferred_element_type=f32)
                        + b2_ref[...])


# ------------------------------ wrapper --------------------------------------
def averaging_rnn_classifier(tokens, doc_lens, params, *, time_block=4):
    """tokens: (B, T) int32, doc_lens: (B,) int -> logits (B, C)."""
    emb = params["emb"]
    B, T = tokens.shape
    E = emb.shape[1]
    H = params["whh_f"].shape[0]
    M = params["w1"].shape[1]
    C = params["w2"].shape[1]

    bf16 = jnp.bfloat16
    LANE, SUB = 128, 8
    B_pad = ((B + SUB - 1) // SUB) * SUB
    Tt = max(1, min(time_block, T))
    T_pad = ((T + Tt - 1) // Tt) * Tt
    n_blocks = T_pad // Tt
    C_pad = ((C + LANE - 1) // LANE) * LANE          # lane-dense output store

    # ---- glue: embedding gather, time-major layout, padding, dtype prep ----
    x = jnp.take(emb, tokens, axis=0)                              # (B, T, E)
    x = jnp.transpose(x, (1, 0, 2))                                # (T, B, E)
    x = jnp.pad(x, ((0, T_pad - T), (0, B_pad - B), (0, 0)))
    x2d = x.reshape(T_pad * B_pad, E).astype(bf16)                 # (T_pad*B_pad, E)

    lens_i = jnp.pad(doc_lens.astype(jnp.int32), (0, B_pad - B)).reshape(B_pad, 1)
    inv_len = 1.0 / jnp.maximum(lens_i, 1).astype(jnp.float32)     # zero-length guard

    wih_f = params["wih_f"].astype(bf16)
    whh_f = params["whh_f"].astype(bf16)
    wih_b = params["wih_b"].astype(bf16)
    whh_b = params["whh_b"].astype(bf16)
    b_f = params["b_f"].astype(jnp.float32)
    b_b = params["b_b"].astype(jnp.float32)
    w1f = params["w1"][:H, :].astype(bf16)     # concat(avg_f, avg_b) @ W1 split in two
    w1b = params["w1"][H:, :].astype(bf16)
    b1 = params["b1"].astype(jnp.float32)
    w2p = jnp.pad(params["w2"], ((0, 0), (0, C_pad - C))).astype(bf16)
    b2p = jnp.pad(params["b2"], ((0, 0), (0, C_pad - C))).astype(jnp.float32)

    def full_spec(arr):                        # whole (2-D) array every grid step
        return pl.BlockSpec(arr.shape, lambda s: (0, 0))

    x_blk = (Tt * B_pad, E)
    in_specs = [
        pl.BlockSpec(x_blk, lambda s: (s, 0)),                     # forward time stream
        pl.BlockSpec(x_blk, lambda s: (n_blocks - 1 - s, 0)),      # reversed time stream
        full_spec(lens_i), full_spec(inv_len),
        full_spec(wih_f), full_spec(whh_f), full_spec(b_f),
        full_spec(wih_b), full_spec(whh_b), full_spec(b_b),
        full_spec(w1f), full_spec(w1b), full_spec(b1),
        full_spec(w2p), full_spec(b2p),
    ]
    out_spec = pl.BlockSpec((B_pad, C_pad), lambda s: (0, 0))
    scratch = [
        pltpu.VMEM((Tt * B_pad, 4 * H), jnp.float32),   # fwd gate pre-activations
        pltpu.VMEM((Tt * B_pad, 4 * H), jnp.float32),   # bwd gate pre-activations
    ] + [pltpu.VMEM((B_pad, H), jnp.float32)] * 6       # h / c / sum per direction

    # Advisory cost estimate (MXU flops dominate).
    flops = int(4 * T_pad * B_pad * 4 * H * (E + H)
                + 2 * T_pad * B_pad * 10 * H
                + 2 * B_pad * (2 * H * M + M * C_pad))
    transcend = int(2 * T_pad * B_pad * 9 * H)
    bytes_acc = int(2 * x2d.size * 2
                    + 2 * (2 * (E + H) * 4 * H + 4 * H)
                    + 2 * (2 * H * M + M * C_pad)
                    + 4 * (M + C_pad + 2 * B_pad)
                    + 4 * B_pad * C_pad)

    out = pl.pallas_call(
        bilstm_avg_mlp_kernel,
        out_shape=jax.ShapeDtypeStruct((B_pad, C_pad), jnp.float32),
        grid_spec=pltpu.PrefetchScalarGridSpec(
            num_scalar_prefetch=0,
            grid=(n_blocks,),
            in_specs=in_specs,
            out_specs=out_spec,
            scratch_shapes=scratch),
        compiler_params=pltpu.CompilerParams(
            dimension_semantics=("arbitrary",),          # time axis carries h/c/sum
            vmem_limit_bytes=32 * 1024 * 1024),
        cost_estimate=pl.CostEstimate(flops=flops, transcendentals=transcend,
                                      bytes_accessed=bytes_acc),
    )(x2d, x2d, lens_i, inv_len,
      wih_f, whh_f, b_f, wih_b, whh_b, b_b,
      w1f, w1b, b1, w2p, b2p)

    return out[:B, :C]


# --------------------------- pure-JAX reference -------------------------------
def reference_forward(tokens, doc_lens, params):
    emb = params["emb"]
    x = jnp.transpose(jnp.take(emb, tokens, axis=0), (1, 0, 2))    # (T, B, E)
    lens = doc_lens.astype(jnp.float32).reshape(-1, 1)
    T, B, _ = x.shape
    H = params["whh_f"].shape[0]

    def step(xt, h, c, wih, whh, b):
        g = xt @ wih + h @ whh + b
        i = jax.nn.sigmoid(g[:, :H]); f = jax.nn.sigmoid(g[:, H:2 * H])
        gg = jnp.tanh(g[:, 2 * H:3 * H]); o = jax.nn.sigmoid(g[:, 3 * H:])
        c_new = f * c + i * gg
        return o * jnp.tanh(c_new), c_new

    h = c = s_f = jnp.zeros((B, H), jnp.float32)
    for t in range(T):
        hn, cn = step(x[t], h, c, params["wih_f"], params["whh_f"], params["b_f"])
        m = (t < lens)
        h = jnp.where(m, hn, h); c = jnp.where(m, cn, c)
        s_f = s_f + jnp.where(m, hn, 0.0)

    h = c = s_b = jnp.zeros((B, H), jnp.float32)
    for t in range(T - 1, -1, -1):
        hn, cn = step(x[t], h, c, params["wih_b"], params["whh_b"], params["b_b"])
        m = (t < lens)
        h = jnp.where(m, hn, 0.0); c = jnp.where(m, cn, 0.0)
        s_b = s_b + jnp.where(m, hn, 0.0)

    avg = jnp.concatenate([s_f, s_b], axis=1) / lens
    hid = jnp.maximum(avg @ params["w1"] + params["b1"], 0.0)
    return hid @ params["w2"] + params["b2"]


# --------------------------------- main ---------------------------------------
if __name__ == "__main__":
    # Small shapes consistent with the module's forward pass.
    V, E = 50, 32          # vocab size, embedding dim
    H = 32                 # LSTM hidden dim (per direction); num_directions = 2
    M = 32                 # MLP hidden dim
    C = 3                  # num classes
    B, T = 4, 8            # batch, max doc length

    key = jax.random.PRNGKey(0)
    ks = jax.random.split(key, 16)
    u = lambda k, shape, s: jax.random.uniform(k, shape, jnp.float32, -s, s)
    scale = 1.0 / np.sqrt(H)

    params = {
        "emb":   u(ks[0], (V, E), 0.5),
        # forward-direction LSTM (weights stored (in, 4H); gate order i,f,g,o)
        "wih_f": u(ks[1], (E, 4 * H), scale),
        "whh_f": u(ks[2], (H, 4 * H), scale),
        "b_f":   u(ks[3], (1, 4 * H), scale),   # = b_ih + b_hh folded together
        # backward-direction LSTM
        "wih_b": u(ks[4], (E, 4 * H), scale),
        "whh_b": u(ks[5], (H, 4 * H), scale),
        "b_b":   u(ks[6], (1, 4 * H), scale),
        # MLP: Linear(2H, M) -> ReLU -> Linear(M, C)   (num_mlp_layers = 2)
        "w1":    u(ks[7], (2 * H, M), 1.0 / np.sqrt(2 * H)),
        "b1":    u(ks[8], (1, M), 1.0 / np.sqrt(2 * H)),
        "w2":    u(ks[9], (M, C), 1.0 / np.sqrt(M)),
        "b2":    u(ks[10], (1, C), 1.0 / np.sqrt(M)),
    }

    tokens = jax.random.randint(ks[11], (B, T), 0, V, dtype=jnp.int32)
    doc_lens = jnp.array([8, 5, 3, 6], dtype=jnp.int32)

    out = averaging_rnn_classifier(tokens, doc_lens, params)
    out = jax.block_until_ready(out)

    # f32 reference; kernel uses bf16 MXU operands (f32 accum), so compare loosely.
    ref = reference_forward(tokens, doc_lens, params)
    np.testing.assert_allclose(np.asarray(out), np.asarray(ref),
                               rtol=2e-2, atol=2e-2)

    # TODO(synk): optional dropout from the PyTorch forward() is not implemented
    # (inference path only); cell_type=GRU variant is not implemented.
    print("KERNEL_OK")
</pallas_src>

<mosaic_0001>
module attributes {stable_mosaic.version = 11 : i64} {
  func.func @bilstm_avg_mlp_kernel(%arg0: i32, %arg1: memref<32x32xbf16, #tpu.memory_space<vmem>>, %arg2: memref<32x32xbf16, #tpu.memory_space<vmem>>, %arg3: memref<8x1xi32, #tpu.memory_space<vmem>>, %arg4: memref<8x1xf32, #tpu.memory_space<vmem>>, %arg5: memref<32x128xbf16, #tpu.memory_space<vmem>>, %arg6: memref<32x128xbf16, #tpu.memory_space<vmem>>, %arg7: memref<1x128xf32, #tpu.memory_space<vmem>>, %arg8: memref<32x128xbf16, #tpu.memory_space<vmem>>, %arg9: memref<32x128xbf16, #tpu.memory_space<vmem>>, %arg10: memref<1x128xf32, #tpu.memory_space<vmem>>, %arg11: memref<32x32xbf16, #tpu.memory_space<vmem>>, %arg12: memref<32x32xbf16, #tpu.memory_space<vmem>>, %arg13: memref<1x32xf32, #tpu.memory_space<vmem>>, %arg14: memref<32x128xbf16, #tpu.memory_space<vmem>>, %arg15: memref<1x128xf32, #tpu.memory_space<vmem>>, %arg16: memref<8x128xf32, #tpu.memory_space<vmem>>, %arg17: memref<32x128xf32, #tpu.memory_space<vmem>>, %arg18: memref<32x128xf32, #tpu.memory_space<vmem>>, %arg19: memref<8x32xf32, #tpu.memory_space<vmem>>, %arg20: memref<8x32xf32, #tpu.memory_space<vmem>>, %arg21: memref<8x32xf32, #tpu.memory_space<vmem>>, %arg22: memref<8x32xf32, #tpu.memory_space<vmem>>, %arg23: memref<8x32xf32, #tpu.memory_space<vmem>>, %arg24: memref<8x32xf32, #tpu.memory_space<vmem>>) attributes {dimension_semantics = [#tpu.dimension_semantics<arbitrary>], iteration_bounds = array<i64: 2>, scalar_prefetch = 0 : i64, scratch_operands = 8 : i64, tpu.core_type = #tpu.core_type<tc>, window_params = [{transform_indices = @transform_0, window_bounds = array<i64: 32, 32>}, {transform_indices = @transform_1, window_bounds = array<i64: 32, 32>}, {pipeline_mode = #tpu.pipeline_mode<synchronous>, transform_indices = @transform_2, window_bounds = array<i64: 8, 1>}, {pipeline_mode = #tpu.pipeline_mode<synchronous>, transform_indices = @transform_3, window_bounds = array<i64: 8, 1>}, {pipeline_mode = #tpu.pipeline_mode<synchronous>, transform_indices = @transform_4, window_bounds = array<i64: 32, 128>}, {pipeline_mode = #tpu.pipeline_mode<synchronous>, transform_indices = @transform_5, window_bounds = array<i64: 32, 128>}, {pipeline_mode = #tpu.pipeline_mode<synchronous>, transform_indices = @transform_6, window_bounds = array<i64: 1, 128>}, {pipeline_mode = #tpu.pipeline_mode<synchronous>, transform_indices = @transform_7, window_bounds = array<i64: 32, 128>}, {pipeline_mode = #tpu.pipeline_mode<synchronous>, transform_indices = @transform_8, window_bounds = array<i64: 32, 128>}, {pipeline_mode = #tpu.pipeline_mode<synchronous>, transform_indices = @transform_9, window_bounds = array<i64: 1, 128>}, {pipeline_mode = #tpu.pipeline_mode<synchronous>, transform_indices = @transform_10, window_bounds = array<i64: 32, 32>}, {pipeline_mode = #tpu.pipeline_mode<synchronous>, transform_indices = @transform_11, window_bounds = array<i64: 32, 32>}, {pipeline_mode = #tpu.pipeline_mode<synchronous>, transform_indices = @transform_12, window_bounds = array<i64: 1, 32>}, {pipeline_mode = #tpu.pipeline_mode<synchronous>, transform_indices = @transform_13, window_bounds = array<i64: 32, 128>}, {pipeline_mode = #tpu.pipeline_mode<synchronous>, transform_indices = @transform_14, window_bounds = array<i64: 1, 128>}, {pipeline_mode = #tpu.pipeline_mode<synchronous>, transform_indices = @transform_15, window_bounds = array<i64: 8, 128>}]} {
    %c0_i32 = arith.constant 0 : i32
    %0 = arith.cmpi eq, %arg0, %c0_i32 : i32
    %1 = arith.extui %0 : i1 to i32
    %c0_i32_0 = arith.constant 0 : i32
    %2 = arith.cmpi ne, %1, %c0_i32_0 : i32
    scf.if %2 {
      %cst_104 = arith.constant 0.000000e+00 : f32
      %352 = vector.broadcast %cst_104 : f32 to vector<8x32xf32>
      %c0_105 = arith.constant 0 : index
      %c0_106 = arith.constant 0 : index
      %353 = vector.load %arg19[%c0_105, %c0_106] : memref<8x32xf32, #tpu.memory_space<vmem>>, vector<8x32xf32>
      tpu.vector_store %arg19[%c0_105, %c0_106], %352 {strides = array<i32>} : memref<8x32xf32, #tpu.memory_space<vmem>>, vector<8x32xf32>,
      %c0_107 = arith.constant 0 : index
      %c0_108 = arith.constant 0 : index
      %354 = vector.load %arg20[%c0_107, %c0_108] : memref<8x32xf32, #tpu.memory_space<vmem>>, vector<8x32xf32>
      tpu.vector_store %arg20[%c0_107, %c0_108], %352 {strides = array<i32>} : memref<8x32xf32, #tpu.memory_space<vmem>>, vector<8x32xf32>,
      %c0_109 = arith.constant 0 : index
      %c0_110 = arith.constant 0 : index
      %355 = vector.load %arg21[%c0_109, %c0_110] : memref<8x32xf32, #tpu.memory_space<vmem>>, vector<8x32xf32>
      tpu.vector_store %arg21[%c0_109, %c0_110], %352 {strides = array<i32>} : memref<8x32xf32, #tpu.memory_space<vmem>>, vector<8x32xf32>,
      %c0_111 = arith.constant 0 : index
      %c0_112 = arith.constant 0 : index
      %356 = vector.load %arg22[%c0_111, %c0_112] : memref<8x32xf32, #tpu.memory_space<vmem>>, vector<8x32xf32>
      tpu.vector_store %arg22[%c0_111, %c0_112], %352 {strides = array<i32>} : memref<8x32xf32, #tpu.memory_space<vmem>>, vector<8x32xf32>,
      %c0_113 = arith.constant 0 : index
      %c0_114 = arith.constant 0 : index
      %357 = vector.load %arg23[%c0_113, %c0_114] : memref<8x32xf32, #tpu.memory_space<vmem>>, vector<8x32xf32>
      tpu.vector_store %arg23[%c0_113, %c0_114], %352 {strides = array<i32>} : memref<8x32xf32, #tpu.memory_space<vmem>>, vector<8x32xf32>,
      %c0_115 = arith.constant 0 : index
      %c0_116 = arith.constant 0 : index
      %358 = vector.load %arg24[%c0_115, %c0_116] : memref<8x32xf32, #tpu.memory_space<vmem>>, vector<8x32xf32>
      tpu.vector_store %arg24[%c0_115, %c0_116], %352 {strides = array<i32>} : memref<8x32xf32, #tpu.memory_space<vmem>>, vector<8x32xf32>,
      %cst_117 = arith.constant 0.000000e+00 : f32
      %359 = vector.broadcast %cst_117 : f32 to vector<8x128xf32>
      %c0_118 = arith.constant 0 : index
      %c0_119 = arith.constant 0 : index
      %360 = vector.load %arg16[%c0_118, %c0_119] : memref<8x128xf32, #tpu.memory_space<vmem>>, vector<8x128xf32>
      tpu.vector_store %arg16[%c0_118, %c0_119], %359 {strides = array<i32>} : memref<8x128xf32, #tpu.memory_space<vmem>>, vector<8x128xf32>,
    } else {
    }
    %c0 = arith.constant 0 : index
    %c0_1 = arith.constant 0 : index
    %3 = vector.load %arg1[%c0, %c0_1] : memref<32x32xbf16, #tpu.memory_space<vmem>>, vector<32x32xbf16>
    %c0_2 = arith.constant 0 : index
    %c0_3 = arith.constant 0 : index
    %4 = vector.load %arg5[%c0_2, %c0_3] : memref<32x128xbf16, #tpu.memory_space<vmem>>, vector<32x128xbf16>
    %cst = arith.constant dense<0.000000e+00> : vector<32x128xf32>
    %5 = tpu.matmul %3, %4, %cst {dimension_numbers = #tpu.dot_dimension_numbers<[1], [0], [0], [1], [0, 0, 1, 1], [], []>} : vector<32x32xbf16>, vector<32x128xbf16>, vector<32x128xf32> -> vector<32x128xf32>
    %c0_4 = arith.constant 0 : index
    %c0_5 = arith.constant 0 : index
    %6 = vector.load %arg7[%c0_4, %c0_5] : memref<1x128xf32, #tpu.memory_space<vmem>>, vector<1x128xf32>
    %7 = vector.broadcast %6 : vector<1x128xf32> to vector<32x128xf32>
    %8 = arith.addf %5, %7 : vector<32x128xf32>
    %c0_6 = arith.constant 0 : index
    %c0_7 = arith.constant 0 : index
    %9 = vector.load %arg17[%c0_6, %c0_7] : memref<32x128xf32, #tpu.memory_space<vmem>>, vector<32x128xf32>
    tpu.vector_store %arg17[%c0_6, %c0_7], %8 {strides = array<i32>} : memref<32x128xf32, #tpu.memory_space<vmem>>, vector<32x128xf32>,
    %c0_8 = arith.constant 0 : index
    %c0_9 = arith.constant 0 : index
    %10 = vector.load %arg2[%c0_8, %c0_9] : memref<32x32xbf16, #tpu.memory_space<vmem>>, vector<32x32xbf16>
    %c0_10 = arith.constant 0 : index
    %c0_11 = arith.constant 0 : index
    %11 = vector.load %arg8[%c0_10, %c0_11] : memref<32x128xbf16, #tpu.memory_space<vmem>>, vector<32x128xbf16>
    %cst_12 = arith.constant dense<0.000000e+00> : vector<32x128xf32>
    %12 = tpu.matmul %10, %11, %cst_12 {dimension_numbers = #tpu.dot_dimension_numbers<[1], [0], [0], [1], [0, 0, 1, 1], [], []>} : vector<32x32xbf16>, vector<32x128xbf16>, vector<32x128xf32> -> vector<32x128xf32>
    %c0_13 = arith.constant 0 : index
    %c0_14 = arith.constant 0 : index
    %13 = vector.load %arg10[%c0_13, %c0_14] : memref<1x128xf32, #tpu.memory_space<vmem>>, vector<1x128xf32>
    %14 = vector.broadcast %13 : vector<1x128xf32> to vector<32x128xf32>
    %15 = arith.addf %12, %14 : vector<32x128xf32>
    %c0_15 = arith.constant 0 : index
    %c0_16 = arith.constant 0 : index
    %16 = vector.load %arg18[%c0_15, %c0_16] : memref<32x128xf32, #tpu.memory_space<vmem>>, vector<32x128xf32>
    tpu.vector_store %arg18[%c0_15, %c0_16], %15 {strides = array<i32>} : memref<32x128xf32, #tpu.memory_space<vmem>>, vector<32x128xf32>,
    %c0_17 = arith.constant 0 : index
    %c0_18 = arith.constant 0 : index
    %17 = vector.load %arg6[%c0_17, %c0_18] : memref<32x128xbf16, #tpu.memory_space<vmem>>, vector<32x128xbf16>
    %c0_19 = arith.constant 0 : index
    %c0_20 = arith.constant 0 : index
    %18 = vector.load %arg9[%c0_19, %c0_20] : memref<32x128xbf16, #tpu.memory_space<vmem>>, vector<32x128xbf16>
    %c0_21 = arith.constant 0 : index
    %c0_22 = arith.constant 0 : index
    %19 = vector.load %arg3[%c0_21, %c0_22] : memref<8x1xi32, #tpu.memory_space<vmem>>, vector<8x1xi32>
    %20 = tpu.iota {dimensions = array<i32: 1>} : vector<8x128xi32>
    %c64_i32 = arith.constant 64 : i32
    %21 = vector.broadcast %c64_i32 : i32 to vector<8x128xi32>
    %22 = arith.cmpi sge, %20, %21 : vector<8x128xi32>
    %c96_i32 = arith.constant 96 : i32
    %23 = vector.broadcast %c96_i32 : i32 to vector<8x128xi32>
    %24 = arith.cmpi slt, %20, %23 : vector<8x128xi32>
    %25 = arith.andi %22, %24 : vector<8x128xi1>
    %c4_i32 = arith.constant 4 : i32
    %26 = arith.muli %arg0, %c4_i32 : i32
    %c1_i32 = arith.constant 1 : i32
    %27 = arith.subi %c1_i32, %arg0 : i32
    %c4_i32_23 = arith.constant 4 : i32
    %28 = arith.muli %27, %c4_i32_23 : i32
    %c0_24 = arith.constant 0 : index
    %c0_25 = arith.constant 0 : index
    %29 = vector.load %arg19[%c0_24, %c0_25] : memref<8x32xf32, #tpu.memory_space<vmem>>, vector<8x32xf32>
    %c0_26 = arith.constant 0 : index
    %c0_27 = arith.constant 0 : index
    %30 = vector.load %arg20[%c0_26, %c0_27] : memref<8x32xf32, #tpu.memory_space<vmem>>, vector<8x32xf32>
    %c0_28 = arith.constant 0 : index
    %c0_29 = arith.constant 0 : index
    %31 = vector.load %arg21[%c0_28, %c0_29] : memref<8x32xf32, #tpu.memory_space<vmem>>, vector<8x32xf32>
    %c0_30 = arith.constant 0 : index
    %c0_31 = arith.constant 0 : index
    %32 = vector.load %arg22[%c0_30, %c0_31] : memref<8x32xf32, #tpu.memory_space<vmem>>, vector<8x32xf32>
    %c0_32 = arith.constant 0 : index
    %c0_33 = arith.constant 0 : index
    %33 = vector.load %arg23[%c0_32, %c0_33] : memref<8x32xf32, #tpu.memory_space<vmem>>, vector<8x32xf32>
    %c0_34 = arith.constant 0 : index
    %c0_35 = arith.constant 0 : index
    %34 = vector.load %arg24[%c0_34, %c0_35] : memref<8x32xf32, #tpu.memory_space<vmem>>, vector<8x32xf32>
    %c0_i32_36 = arith.constant 0 : i32
    %c8_i32 = arith.constant 8 : i32
    %35 = arith.muli %c0_i32_36, %c8_i32 : i32
    %36 = tpu.assume_multiple %35, 8 : i32
    %37 = arith.index_cast %36 : i32 to index
    %c0_37 = arith.constant 0 : index
    %38 = vector.load %arg17[%37, %c0_37] : memref<32x128xf32, #tpu.memory_space<vmem>>, vector<8x128xf32>
    %39 = arith.truncf %29 : vector<8x32xf32> to vector<8x32xbf16>
    %cst_38 = arith.constant dense<0.000000e+00> : vector<8x128xf32>
    %40 = tpu.matmul %39, %17, %cst_38 {dimension_numbers = #tpu.dot_dimension_numbers<[1], [0], [0], [1], [0, 0, 1, 1], [], []>} : vector<8x32xbf16>, vector<32x128xbf16>, vector<8x128xf32> -> vector<8x128xf32>
    %41 = arith.addf %38, %40 : vector<8x128xf32>
    %42 = math.tanh %41 : vector<8x128xf32>
    %43 = arith.negf %41 : vector<8x128xf32>
    %44 = math.exp %43 : vector<8x128xf32>
    %cst_39 = arith.constant 1.000000e+00 : f32
    %45 = vector.broadcast %cst_39 : f32 to vector<8x128xf32>
    %46 = arith.addf %45, %44 : vector<8x128xf32>
    %47 = arith.divf %45, %46 : vector<8x128xf32>
    %48 = arith.select %25, %42, %47 : vector<8x128xi1>, vector<8x128xf32>
    %49 = vector.extract_strided_slice %48 {offsets = [0, 0], sizes = [8, 32], strides = [1, 1]} : vector<8x128xf32> to vector<8x32xf32>
    %50 = vector.extract_strided_slice %48 {offsets = [0, 32], sizes = [8, 32], strides = [1, 1]} : vector<8x128xf32> to vector<8x32xf32>
    %51 = vector.extract_strided_slice %48 {offsets = [0, 64], sizes = [8, 32], strides = [1, 1]} : vector<8x128xf32> to vector<8x32xf32>
    %52 = vector.extract_strided_slice %48 {offsets = [0, 96], sizes = [8, 32], strides = [1, 1]} : vector<8x128xf32> to vector<8x32xf32>
    %53 = arith.mulf %50, %30 : vector<8x32xf32>
    %54 = arith.mulf %49, %51 : vector<8x32xf32>
    %55 = arith.addf %53, %54 : vector<8x32xf32>
    %56 = math.tanh %55 : vector<8x32xf32>
    %57 = arith.mulf %52, %56 : vector<8x32xf32>
    %58 = arith.addi %26, %c0_i32_36 : i32
    %59 = vector.broadcast %58 : i32 to vector<8x1xi32>
    %60 = arith.cmpi slt, %59, %19 : vector<8x1xi32>
    %61 = vector.shape_cast %60 : vector<8x1xi1> to vector<8x1xi1>
    %62 = vector.broadcast %61 : vector<8x1xi1> to vector<8x32xi1>
    %63 = arith.select %62, %57, %29 : vector<8x32xi1>, vector<8x32xf32>
    %64 = vector.shape_cast %60 : vector<8x1xi1> to vector<8x1xi1>
    %65 = vector.broadcast %64 : vector<8x1xi1> to vector<8x32xi1>
    %66 = arith.select %65, %55, %30 : vector<8x32xi1>, vector<8x32xf32>
    %cst_40 = arith.constant 0.000000e+00 : f32
    %67 = vector.shape_cast %60 : vector<8x1xi1> to vector<8x1xi1>
    %68 = vector.broadcast %67 : vector<8x1xi1> to vector<8x32xi1>
    %69 = vector.broadcast %cst_40 : f32 to vector<8x32xf32>
    %70 = arith.select %68, %57, %69 : vector<8x32xi1>, vector<8x32xf32>
    %71 = arith.addf %31, %70 : vector<8x32xf32>
    %c3_i32 = arith.constant 3 : i32
    %72 = arith.subi %c3_i32, %c0_i32_36 : i32
    %c8_i32_41 = arith.constant 8 : i32
    %73 = arith.muli %72, %c8_i32_41 : i32
    %74 = tpu.assume_multiple %73, 8 : i32
    %75 = arith.index_cast %74 : i32 to index
    %c0_42 = arith.constant 0 : index
    %76 = vector.load %arg18[%75, %c0_42] : memref<32x128xf32, #tpu.memory_space<vmem>>, vector<8x128xf32>
    %77 = arith.truncf %32 : vector<8x32xf32> to vector<8x32xbf16>
    %cst_43 = arith.constant dense<0.000000e+00> : vector<8x128xf32>
    %78 = tpu.matmul %77, %18, %cst_43 {dimension_numbers = #tpu.dot_dimension_numbers<[1], [0], [0], [1], [0, 0, 1, 1], [], []>} : vector<8x32xbf16>, vector<32x128xbf16>, vector<8x128xf32> -> vector<8x128xf32>
    %79 = arith.addf %76, %78 : vector<8x128xf32>
    %80 = math.tanh %79 : vector<8x128xf32>
    %81 = arith.negf %79 : vector<8x128xf32>
    %82 = math.exp %81 : vector<8x128xf32>
    %cst_44 = arith.constant 1.000000e+00 : f32
    %83 = vector.broadcast %cst_44 : f32 to vector<8x128xf32>
    %84 = arith.addf %83, %82 : vector<8x128xf32>
    %85 = arith.divf %83, %84 : vector<8x128xf32>
    %86 = arith.select %25, %80, %85 : vector<8x128xi1>, vector<8x128xf32>
    %87 = vector.extract_strided_slice %86 {offsets = [0, 0], sizes = [8, 32], strides = [1, 1]} : vector<8x128xf32> to vector<8x32xf32>
    %88 = vector.extract_strided_slice %86 {offsets = [0, 32], sizes = [8, 32], strides = [1, 1]} : vector<8x128xf32> to vector<8x32xf32>
    %89 = vector.extract_strided_slice %86 {offsets = [0, 64], sizes = [8, 32], strides = [1, 1]} : vector<8x128xf32> to vector<8x32xf32>
    %90 = vector.extract_strided_slice %86 {offsets = [0, 96], sizes = [8, 32], strides = [1, 1]} : vector<8x128xf32> to vector<8x32xf32>
    %91 = arith.mulf %88, %33 : vector<8x32xf32>
    %92 = arith.mulf %87, %89 : vector<8x32xf32>
    %93 = arith.addf %91, %92 : vector<8x32xf32>
    %94 = math.tanh %93 : vector<8x32xf32>
    %95 = arith.mulf %90, %94 : vector<8x32xf32>
    %96 = arith.addi %28, %72 : i32
    %97 = vector.broadcast %96 : i32 to vector<8x1xi32>
    %98 = arith.cmpi slt, %97, %19 : vector<8x1xi32>
    %cst_45 = arith.constant 0.000000e+00 : f32
    %99 = vector.shape_cast %98 : vector<8x1xi1> to vector<8x1xi1>
    %100 = vector.broadcast %99 : vector<8x1xi1> to vector<8x32xi1>
    %101 = vector.broadcast %cst_45 : f32 to vector<8x32xf32>
    %102 = arith.select %100, %95, %101 : vector<8x32xi1>, vector<8x32xf32>
    %cst_46 = arith.constant 0.000000e+00 : f32
    %103 = vector.shape_cast %98 : vector<8x1xi1> to vector<8x1xi1>
    %104 = vector.broadcast %103 : vector<8x1xi1> to vector<8x32xi1>
    %105 = vector.broadcast %cst_46 : f32 to vector<8x32xf32>
    %106 = arith.select %104, %93, %105 : vector<8x32xi1>, vector<8x32xf32>
    %cst_47 = arith.constant 0.000000e+00 : f32
    %107 = vector.shape_cast %98 : vector<8x1xi1> to vector<8x1xi1>
    %108 = vector.broadcast %107 : vector<8x1xi1> to vector<8x32xi1>
    %109 = vector.broadcast %cst_47 : f32 to vector<8x32xf32>
    %110 = arith.select %108, %95, %109 : vector<8x32xi1>, vector<8x32xf32>
    %111 = arith.addf %34, %110 : vector<8x32xf32>
    %c1_i32_48 = arith.constant 1 : i32
    %c8_i32_49 = arith.constant 8 : i32
    %112 = arith.muli %c1_i32_48, %c8_i32_49 : i32
    %113 = tpu.assume_multiple %112, 8 : i32
    %114 = arith.index_cast %113 : i32 to index
    %c0_50 = arith.constant 0 : index
    %115 = vector.load %arg17[%114, %c0_50] : memref<32x128xf32, #tpu.memory_space<vmem>>, vector<8x128xf32>
    %116 = arith.truncf %63 : vector<8x32xf32> to vector<8x32xbf16>
    %cst_51 = arith.constant dense<0.000000e+00> : vector<8x128xf32>
    %117 = tpu.matmul %116, %17, %cst_51 {dimension_numbers = #tpu.dot_dimension_numbers<[1], [0], [0], [1], [0, 0, 1, 1], [], []>} : vector<8x32xbf16>, vector<32x128xbf16>, vector<8x128xf32> -> vector<8x128xf32>
    %118 = arith.addf %115, %117 : vector<8x128xf32>
    %119 = math.tanh %118 : vector<8x128xf32>
    %120 = arith.negf %118 : vector<8x128xf32>
    %121 = math.exp %120 : vector<8x128xf32>
    %cst_52 = arith.constant 1.000000e+00 : f32
    %122 = vector.broadcast %cst_52 : f32 to vector<8x128xf32>
    %123 = arith.addf %122, %121 : vector<8x128xf32>
    %124 = arith.divf %122, %123 : vector<8x128xf32>
    %125 = arith.select %25, %119, %124 : vector<8x128xi1>, vector<8x128xf32>
    %126 = vector.extract_strided_slice %125 {offsets = [0, 0], sizes = [8, 32], strides = [1, 1]} : vector<8x128xf32> to vector<8x32xf32>
    %127 = vector.extract_strided_slice %125 {offsets = [0, 32], sizes = [8, 32], strides = [1, 1]} : vector<8x128xf32> to vector<8x32xf32>
    %128 = vector.extract_strided_slice %125 {offsets = [0, 64], sizes = [8, 32], strides = [1, 1]} : vector<8x128xf32> to vector<8x32xf32>
    %129 = vector.extract_strided_slice %125 {offsets = [0, 96], sizes = [8, 32], strides = [1, 1]} : vector<8x128xf32> to vector<8x32xf32>
    %130 = arith.mulf %127, %66 : vector<8x32xf32>
    %131 = arith.mulf %126, %128 : vector<8x32xf32>
    %132 = arith.addf %130, %131 : vector<8x32xf32>
    %133 = math.tanh %132 : vector<8x32xf32>
    %134 = arith.mulf %129, %133 : vector<8x32xf32>
    %135 = arith.addi %26, %c1_i32_48 : i32
    %136 = vector.broadcast %135 : i32 to vector<8x1xi32>
    %137 = arith.cmpi slt, %136, %19 : vector<8x1xi32>
    %138 = vector.shape_cast %137 : vector<8x1xi1> to vector<8x1xi1>
    %139 = vector.broadcast %138 : vector<8x1xi1> to vector<8x32xi1>
    %140 = arith.select %139, %134, %63 : vector<8x32xi1>, vector<8x32xf32>
    %141 = vector.shape_cast %137 : vector<8x1xi1> to vector<8x1xi1>
    %142 = vector.broadcast %141 : vector<8x1xi1> to vector<8x32xi1>
    %143 = arith.select %142, %132, %66 : vector<8x32xi1>, vector<8x32xf32>
    %cst_53 = arith.constant 0.000000e+00 : f32
    %144 = vector.shape_cast %137 : vector<8x1xi1> to vector<8x1xi1>
    %145 = vector.broadcast %144 : vector<8x1xi1> to vector<8x32xi1>
    %146 = vector.broadcast %cst_53 : f32 to vector<8x32xf32>
    %147 = arith.select %145, %134, %146 : vector<8x32xi1>, vector<8x32xf32>
    %148 = arith.addf %71, %147 : vector<8x32xf32>
    %c3_i32_54 = arith.constant 3 : i32
    %149 = arith.subi %c3_i32_54, %c1_i32_48 : i32
    %c8_i32_55 = arith.constant 8 : i32
    %150 = arith.muli %149, %c8_i32_55 : i32
    %151 = tpu.assume_multiple %150, 8 : i32
    %152 = arith.index_cast %151 : i32 to index
    %c0_56 = arith.constant 0 : index
    %153 = vector.load %arg18[%152, %c0_56] : memref<32x128xf32, #tpu.memory_space<vmem>>, vector<8x128xf32>
    %154 = arith.truncf %102 : vector<8x32xf32> to vector<8x32xbf16>
    %cst_57 = arith.constant dense<0.000000e+00> : vector<8x128xf32>
    %155 = tpu.matmul %154, %18, %cst_57 {dimension_numbers = #tpu.dot_dimension_numbers<[1], [0], [0], [1], [0, 0, 1, 1], [], []>} : vector<8x32xbf16>, vector<32x128xbf16>, vector<8x128xf32> -> vector<8x128xf32>
    %156 = arith.addf %153, %155 : vector<8x128xf32>
    %157 = math.tanh %156 : vector<8x128xf32>
    %158 = arith.negf %156 : vector<8x128xf32>
    %159 = math.exp %158 : vector<8x128xf32>
    %cst_58 = arith.constant 1.000000e+00 : f32
    %160 = vector.broadcast %cst_58 : f32 to vector<8x128xf32>
    %161 = arith.addf %160, %159 : vector<8x128xf32>
    %162 = arith.divf %160, %161 : vector<8x128xf32>
    %163 = arith.select %25, %157, %162 : vector<8x128xi1>, vector<8x128xf32>
    %164 = vector.extract_strided_slice %163 {offsets = [0, 0], sizes = [8, 32], strides = [1, 1]} : vector<8x128xf32> to vector<8x32xf32>
    %165 = vector.extract_strided_slice %163 {offsets = [0, 32], sizes = [8, 32], strides = [1, 1]} : vector<8x128xf32> to vector<8x32xf32>
    %166 = vector.extract_strided_slice %163 {offsets = [0, 64], sizes = [8, 32], strides = [1, 1]} : vector<8x128xf32> to vector<8x32xf32>
    %167 = vector.extract_strided_slice %163 {offsets = [0, 96], sizes = [8, 32], strides = [1, 1]} : vector<8x128xf32> to vector<8x32xf32>
    %168 = arith.mulf %165, %106 : vector<8x32xf32>
    %169 = arith.mulf %164, %166 : vector<8x32xf32>
    %170 = arith.addf %168, %169 : vector<8x32xf32>
    %171 = math.tanh %170 : vector<8x32xf32>
    %172 = arith.mulf %167, %171 : vector<8x32xf32>
    %173 = arith.addi %28, %149 : i32
    %174 = vector.broadcast %173 : i32 to vector<8x1xi32>
    %175 = arith.cmpi slt, %174, %19 : vector<8x1xi32>
    %cst_59 = arith.constant 0.000000e+00 : f32
    %176 = vector.shape_cast %175 : vector<8x1xi1> to vector<8x1xi1>
    %177 = vector.broadcast %176 : vector<8x1xi1> to vector<8x32xi1>
    %178 = vector.broadcast %cst_59 : f32 to vector<8x32xf32>
    %179 = arith.select %177, %172, %178 : vector<8x32xi1>, vector<8x32xf32>
    %cst_60 = arith.constant 0.000000e+00 : f32
    %180 = vector.shape_cast %175 : vector<8x1xi1> to vector<8x1xi1>
    %181 = vector.broadcast %180 : vector<8x1xi1> to vector<8x32xi1>
    %182 = vector.broadcast %cst_60 : f32 to vector<8x32xf32>
    %183 = arith.select %181, %170, %182 : vector<8x32xi1>, vector<8x32xf32>
    %cst_61 = arith.constant 0.000000e+00 : f32
    %184 = vector.shape_cast %175 : vector<8x1xi1> to vector<8x1xi1>
    %185 = vector.broadcast %184 : vector<8x1xi1> to vector<8x32xi1>
    %186 = vector.broadcast %cst_61 : f32 to vector<8x32xf32>
    %187 = arith.select %185, %172, %186 : vector<8x32xi1>, vector<8x32xf32>
    %188 = arith.addf %111, %187 : vector<8x32xf32>
    %c2_i32 = arith.constant 2 : i32
    %c8_i32_62 = arith.constant 8 : i32
    %189 = arith.muli %c2_i32, %c8_i32_62 : i32
    %190 = tpu.assume_multiple %189, 8 : i32
    %191 = arith.index_cast %190 : i32 to index
    %c0_63 = arith.constant 0 : index
    %192 = vector.load %arg17[%191, %c0_63] : memref<32x128xf32, #tpu.memory_space<vmem>>, vector<8x128xf32>
    %193 = arith.truncf %140 : vector<8x32xf32> to vector<8x32xbf16>
    %cst_64 = arith.constant dense<0.000000e+00> : vector<8x128xf32>
    %194 = tpu.matmul %193, %17, %cst_64 {dimension_numbers = #tpu.dot_dimension_numbers<[1], [0], [0], [1], [0, 0, 1, 1], [], []>} : vector<8x32xbf16>, vector<32x128xbf16>, vector<8x128xf32> -> vector<8x128xf32>
    %195 = arith.addf %192, %194 : vector<8x128xf32>
    %196 = math.tanh %195 : vector<8x128xf32>
    %197 = arith.negf %195 : vector<8x128xf32>
    %198 = math.exp %197 : vector<8x128xf32>
    %cst_65 = arith.constant 1.000000e+00 : f32
    %199 = vector.broadcast %cst_65 : f32 to vector<8x128xf32>
    %200 = arith.addf %199, %198 : vector<8x128xf32>
    %201 = arith.divf %199, %200 : vector<8x128xf32>
    %202 = arith.select %25, %196, %201 : vector<8x128xi1>, vector<8x128xf32>
    %203 = vector.extract_strided_slice %202 {offsets = [0, 0], sizes = [8, 32], strides = [1, 1]} : vector<8x128xf32> to vector<8x32xf32>
    %204 = vector.extract_strided_slice %202 {offsets = [0, 32], sizes = [8, 32], strides = [1, 1]} : vector<8x128xf32> to vector<8x32xf32>
    %205 = vector.extract_strided_slice %202 {offsets = [0, 64], sizes = [8, 32], strides = [1, 1]} : vector<8x128xf32> to vector<8x32xf32>
    %206 = vector.extract_strided_slice %202 {offsets = [0, 96], sizes = [8, 32], strides = [1, 1]} : vector<8x128xf32> to vector<8x32xf32>
    %207 = arith.mulf %204, %143 : vector<8x32xf32>
    %208 = arith.mulf %203, %205 : vector<8x32xf32>
    %209 = arith.addf %207, %208 : vector<8x32xf32>
    %210 = math.tanh %209 : vector<8x32xf32>
    %211 = arith.mulf %206, %210 : vector<8x32xf32>
    %212 = arith.addi %26, %c2_i32 : i32
    %213 = vector.broadcast %212 : i32 to vector<8x1xi32>
    %214 = arith.cmpi slt, %213, %19 : vector<8x1xi32>
    %215 = vector.shape_cast %214 : vector<8x1xi1> to vector<8x1xi1>
    %216 = vector.broadcast %215 : vector<8x1xi1> to vector<8x32xi1>
    %217 = arith.select %216, %211, %140 : vector<8x32xi1>, vector<8x32xf32>
    %218 = vector.shape_cast %214 : vector<8x1xi1> to vector<8x1xi1>
    %219 = vector.broadcast %218 : vector<8x1xi1> to vector<8x32xi1>
    %220 = arith.select %219, %209, %143 : vector<8x32xi1>, vector<8x32xf32>
    %cst_66 = arith.constant 0.000000e+00 : f32
    %221 = vector.shape_cast %214 : vector<8x1xi1> to vector<8x1xi1>
    %222 = vector.broadcast %221 : vector<8x1xi1> to vector<8x32xi1>
    %223 = vector.broadcast %cst_66 : f32 to vector<8x32xf32>
    %224 = arith.select %222, %211, %223 : vector<8x32xi1>, vector<8x32xf32>
    %225 = arith.addf %148, %224 : vector<8x32xf32>
    %c3_i32_67 = arith.constant 3 : i32
    %226 = arith.subi %c3_i32_67, %c2_i32 : i32
    %c8_i32_68 = arith.constant 8 : i32
    %227 = arith.muli %226, %c8_i32_68 : i32
    %228 = tpu.assume_multiple %227, 8 : i32
    %229 = arith.index_cast %228 : i32 to index
    %c0_69 = arith.constant 0 : index
    %230 = vector.load %arg18[%229, %c0_69] : memref<32x128xf32, #tpu.memory_space<vmem>>, vector<8x128xf32>
    %231 = arith.truncf %179 : vector<8x32xf32> to vector<8x32xbf16>
    %cst_70 = arith.constant dense<0.000000e+00> : vector<8x128xf32>
    %232 = tpu.matmul %231, %18, %cst_70 {dimension_numbers = #tpu.dot_dimension_numbers<[1], [0], [0], [1], [0, 0, 1, 1], [], []>} : vector<8x32xbf16>, vector<32x128xbf16>, vector<8x128xf32> -> vector<8x128xf32>
    %233 = arith.addf %230, %232 : vector<8x128xf32>
    %234 = math.tanh %233 : vector<8x128xf32>
    %235 = arith.negf %233 : vector<8x128xf32>
    %236 = math.exp %235 : vector<8x128xf32>
    %cst_71 = arith.constant 1.000000e+00 : f32
    %237 = vector.broadcast %cst_71 : f32 to vector<8x128xf32>
    %238 = arith.addf %237, %236 : vector<8x128xf32>
    %239 = arith.divf %237, %238 : vector<8x128xf32>
    %240 = arith.select %25, %234, %239 : vector<8x128xi1>, vector<8x128xf32>
    %241 = vector.extract_strided_slice %240 {offsets = [0, 0], sizes = [8, 32], strides = [1, 1]} : vector<8x128xf32> to vector<8x32xf32>
    %242 = vector.extract_strided_slice %240 {offsets = [0, 32], sizes = [8, 32], strides = [1, 1]} : vector<8x128xf32> to vector<8x32xf32>
    %243 = vector.extract_strided_slice %240 {offsets = [0, 64], sizes = [8, 32], strides = [1, 1]} : vector<8x128xf32> to vector<8x32xf32>
    %244 = vector.extract_strided_slice %240 {offsets = [0, 96], sizes = [8, 32], strides = [1, 1]} : vector<8x128xf32> to vector<8x32xf32>
    %245 = arith.mulf %242, %183 : vector<8x32xf32>
    %246 = arith.mulf %241, %243 : vector<8x32xf32>
    %247 = arith.addf %245, %246 : vector<8x32xf32>
    %248 = math.tanh %247 : vector<8x32xf32>
    %249 = arith.mulf %244, %248 : vector<8x32xf32>
    %250 = arith.addi %28, %226 : i32
    %251 = vector.broadcast %250 : i32 to vector<8x1xi32>
    %252 = arith.cmpi slt, %251, %19 : vector<8x1xi32>
    %cst_72 = arith.constant 0.000000e+00 : f32
    %253 = vector.shape_cast %252 : vector<8x1xi1> to vector<8x1xi1>
    %254 = vector.broadcast %253 : vector<8x1xi1> to vector<8x32xi1>
    %255 = vector.broadcast %cst_72 : f32 to vector<8x32xf32>
    %256 = arith.select %254, %249, %255 : vector<8x32xi1>, vector<8x32xf32>
    %cst_73 = arith.constant 0.000000e+00 : f32
    %257 = vector.shape_cast %252 : vector<8x1xi1> to vector<8x1xi1>
    %258 = vector.broadcast %257 : vector<8x1xi1> to vector<8x32xi1>
    %259 = vector.broadcast %cst_73 : f32 to vector<8x32xf32>
    %260 = arith.select %258, %247, %259 : vector<8x32xi1>, vector<8x32xf32>
    %cst_74 = arith.constant 0.000000e+00 : f32
    %261 = vector.shape_cast %252 : vector<8x1xi1> to vector<8x1xi1>
    %262 = vector.broadcast %261 : vector<8x1xi1> to vector<8x32xi1>
    %263 = vector.broadcast %cst_74 : f32 to vector<8x32xf32>
    %264 = arith.select %262, %249, %263 : vector<8x32xi1>, vector<8x32xf32>
    %265 = arith.addf %188, %264 : vector<8x32xf32>
    %c3_i32_75 = arith.constant 3 : i32
    %c8_i32_76 = arith.constant 8 : i32
    %266 = arith.muli %c3_i32_75, %c8_i32_76 : i32
    %267 = tpu.assume_multiple %266, 8 : i32
    %268 = arith.index_cast %267 : i32 to index
    %c0_77 = arith.constant 0 : index
    %269 = vector.load %arg17[%268, %c0_77] : memref<32x128xf32, #tpu.memory_space<vmem>>, vector<8x128xf32>
    %270 = arith.truncf %217 : vector<8x32xf32> to vector<8x32xbf16>
    %cst_78 = arith.constant dense<0.000000e+00> : vector<8x128xf32>
    %271 = tpu.matmul %270, %17, %cst_78 {dimension_numbers = #tpu.dot_dimension_numbers<[1], [0], [0], [1], [0, 0, 1, 1], [], []>} : vector<8x32xbf16>, vector<32x128xbf16>, vector<8x128xf32> -> vector<8x128xf32>
    %272 = arith.addf %269, %271 : vector<8x128xf32>
    %273 = math.tanh %272 : vector<8x128xf32>
    %274 = arith.negf %272 : vector<8x128xf32>
    %275 = math.exp %274 : vector<8x128xf32>
    %cst_79 = arith.constant 1.000000e+00 : f32
    %276 = vector.broadcast %cst_79 : f32 to vector<8x128xf32>
    %277 = arith.addf %276, %275 : vector<8x128xf32>
    %278 = arith.divf %276, %277 : vector<8x128xf32>
    %279 = arith.select %25, %273, %278 : vector<8x128xi1>, vector<8x128xf32>
    %280 = vector.extract_strided_slice %279 {offsets = [0, 0], sizes = [8, 32], strides = [1, 1]} : vector<8x128xf32> to vector<8x32xf32>
    %281 = vector.extract_strided_slice %279 {offsets = [0, 32], sizes = [8, 32], strides = [1, 1]} : vector<8x128xf32> to vector<8x32xf32>
    %282 = vector.extract_strided_slice %279 {offsets = [0, 64], sizes = [8, 32], strides = [1, 1]} : vector<8x128xf32> to vector<8x32xf32>
    %283 = vector.extract_strided_slice %279 {offsets = [0, 96], sizes = [8, 32], strides = [1, 1]} : vector<8x128xf32> to vector<8x32xf32>
    %284 = arith.mulf %281, %220 : vector<8x32xf32>
    %285 = arith.mulf %280, %282 : vector<8x32xf32>
    %286 = arith.addf %284, %285 : vector<8x32xf32>
    %287 = math.tanh %286 : vector<8x32xf32>
    %288 = arith.mulf %283, %287 : vector<8x32xf32>
    %289 = arith.addi %26, %c3_i32_75 : i32
    %290 = vector.broadcast %289 : i32 to vector<8x1xi32>
    %291 = arith.cmpi slt, %290, %19 : vector<8x1xi32>
    %292 = vector.shape_cast %291 : vector<8x1xi1> to vector<8x1xi1>
    %293 = vector.broadcast %292 : vector<8x1xi1> to vector<8x32xi1>
    %294 = arith.select %293, %288, %217 : vector<8x32xi1>, vector<8x32xf32>
    %295 = vector.shape_cast %291 : vector<8x1xi1> to vector<8x1xi1>
    %296 = vector.broadcast %295 : vector<8x1xi1> to vector<8x32xi1>
    %297 = arith.select %296, %286, %220 : vector<8x32xi1>, vector<8x32xf32>
    %cst_80 = arith.constant 0.000000e+00 : f32
    %298 = vector.shape_cast %291 : vector<8x1xi1> to vector<8x1xi1>
    %299 = vector.broadcast %298 : vector<8x1xi1> to vector<8x32xi1>
    %300 = vector.broadcast %cst_80 : f32 to vector<8x32xf32>
    %301 = arith.select %299, %288, %300 : vector<8x32xi1>, vector<8x32xf32>
    %302 = arith.addf %225, %301 : vector<8x32xf32>
    %c3_i32_81 = arith.constant 3 : i32
    %303 = arith.subi %c3_i32_81, %c3_i32_75 : i32
    %c8_i32_82 = arith.constant 8 : i32
    %304 = arith.muli %303, %c8_i32_82 : i32
    %305 = tpu.assume_multiple %304, 8 : i32
    %306 = arith.index_cast %305 : i32 to index
    %c0_83 = arith.constant 0 : index
    %307 = vector.load %arg18[%306, %c0_83] : memref<32x128xf32, #tpu.memory_space<vmem>>, vector<8x128xf32>
    %308 = arith.truncf %256 : vector<8x32xf32> to vector<8x32xbf16>
    %cst_84 = arith.constant dense<0.000000e+00> : vector<8x128xf32>
    %309 = tpu.matmul %308, %18, %cst_84 {dimension_numbers = #tpu.dot_dimension_numbers<[1], [0], [0], [1], [0, 0, 1, 1], [], []>} : vector<8x32xbf16>, vector<32x128xbf16>, vector<8x128xf32> -> vector<8x128xf32>
    %310 = arith.addf %307, %309 : vector<8x128xf32>
    %311 = math.tanh %310 : vector<8x128xf32>
    %312 = arith.negf %310 : vector<8x128xf32>
    %313 = math.exp %312 : vector<8x128xf32>
    %cst_85 = arith.constant 1.000000e+00 : f32
    %314 = vector.broadcast %cst_85 : f32 to vector<8x128xf32>
    %315 = arith.addf %314, %313 : vector<8x128xf32>
    %316 = arith.divf %314, %315 : vector<8x128xf32>
    %317 = arith.select %25, %311, %316 : vector<8x128xi1>, vector<8x128xf32>
    %318 = vector.extract_strided_slice %317 {offsets = [0, 0], sizes = [8, 32], strides = [1, 1]} : vector<8x128xf32> to vector<8x32xf32>
    %319 = vector.extract_strided_slice %317 {offsets = [0, 32], sizes = [8, 32], strides = [1, 1]} : vector<8x128xf32> to vector<8x32xf32>
    %320 = vector.extract_strided_slice %317 {offsets = [0, 64], sizes = [8, 32], strides = [1, 1]} : vector<8x128xf32> to vector<8x32xf32>
    %321 = vector.extract_strided_slice %317 {offsets = [0, 96], sizes = [8, 32], strides = [1, 1]} : vector<8x128xf32> to vector<8x32xf32>
    %322 = arith.mulf %319, %260 : vector<8x32xf32>
    %323 = arith.mulf %318, %320 : vector<8x32xf32>
    %324 = arith.addf %322, %323 : vector<8x32xf32>
    %325 = math.tanh %324 : vector<8x32xf32>
    %326 = arith.mulf %321, %325 : vector<8x32xf32>
    %327 = arith.addi %28, %303 : i32
    %328 = vector.broadcast %327 : i32 to vector<8x1xi32>
    %329 = arith.cmpi slt, %328, %19 : vector<8x1xi32>
    %cst_86 = arith.constant 0.000000e+00 : f32
    %330 = vector.shape_cast %329 : vector<8x1xi1> to vector<8x1xi1>
    %331 = vector.broadcast %330 : vector<8x1xi1> to vector<8x32xi1>
    %332 = vector.broadcast %cst_86 : f32 to vector<8x32xf32>
    %333 = arith.select %331, %326, %332 : vector<8x32xi1>, vector<8x32xf32>
    %cst_87 = arith.constant 0.000000e+00 : f32
    %334 = vector.shape_cast %329 : vector<8x1xi1> to vector<8x1xi1>
    %335 = vector.broadcast %334 : vector<8x1xi1> to vector<8x32xi1>
    %336 = vector.broadcast %cst_87 : f32 to vector<8x32xf32>
    %337 = arith.select %335, %324, %336 : vector<8x32xi1>, vector<8x32xf32>
    %cst_88 = arith.constant 0.000000e+00 : f32
    %338 = vector.shape_cast %329 : vector<8x1xi1> to vector<8x1xi1>
    %339 = vector.broadcast %338 : vector<8x1xi1> to vector<8x32xi1>
    %340 = vector.broadcast %cst_88 : f32 to vector<8x32xf32>
    %341 = arith.select %339, %326, %340 : vector<8x32xi1>, vector<8x32xf32>
    %342 = arith.addf %265, %341 : vector<8x32xf32>
    %c4_i32_89 = arith.constant 4 : i32
    %c0_90 = arith.constant 0 : index
    %c0_91 = arith.constant 0 : index
    %343 = vector.load %arg19[%c0_90, %c0_91] : memref<8x32xf32, #tpu.memory_space<vmem>>, vector<8x32xf32>
    tpu.vector_store %arg19[%c0_90, %c0_91], %294 {strides = array<i32>} : memref<8x32xf32, #tpu.memory_space<vmem>>, vector<8x32xf32>,
    %c0_92 = arith.constant 0 : index
    %c0_93 = arith.constant 0 : index
    %344 = vector.load %arg20[%c0_92, %c0_93] : memref<8x32xf32, #tpu.memory_space<vmem>>, vector<8x32xf32>
    tpu.vector_store %arg20[%c0_92, %c0_93], %297 {strides = array<i32>} : memref<8x32xf32, #tpu.memory_space<vmem>>, vector<8x32xf32>,
    %c0_94 = arith.constant 0 : index
    %c0_95 = arith.constant 0 : index
    %345 = vector.load %arg21[%c0_94, %c0_95] : memref<8x32xf32, #tpu.memory_space<vmem>>, vector<8x32xf32>
    tpu.vector_store %arg21[%c0_94, %c0_95], %302 {strides = array<i32>} : memref<8x32xf32, #tpu.memory_space<vmem>>, vector<8x32xf32>,
    %c0_96 = arith.constant 0 : index
    %c0_97 = arith.constant 0 : index
    %346 = vector.load %arg22[%c0_96, %c0_97] : memref<8x32xf32, #tpu.memory_space<vmem>>, vector<8x32xf32>
    tpu.vector_store %arg22[%c0_96, %c0_97], %333 {strides = array<i32>} : memref<8x32xf32, #tpu.memory_space<vmem>>, vector<8x32xf32>,
    %c0_98 = arith.constant 0 : index
    %c0_99 = arith.constant 0 : index
    %347 = vector.load %arg23[%c0_98, %c0_99] : memref<8x32xf32, #tpu.memory_space<vmem>>, vector<8x32xf32>
    tpu.vector_store %arg23[%c0_98, %c0_99], %337 {strides = array<i32>} : memref<8x32xf32, #tpu.memory_space<vmem>>, vector<8x32xf32>,
    %c0_100 = arith.constant 0 : index
    %c0_101 = arith.constant 0 : index
    %348 = vector.load %arg24[%c0_100, %c0_101] : memref<8x32xf32, #tpu.memory_space<vmem>>, vector<8x32xf32>
    tpu.vector_store %arg24[%c0_100, %c0_101], %342 {strides = array<i32>} : memref<8x32xf32, #tpu.memory_space<vmem>>, vector<8x32xf32>,
    %c1_i32_102 = arith.constant 1 : i32
    %349 = arith.cmpi eq, %arg0, %c1_i32_102 : i32
    %350 = arith.extui %349 : i1 to i32
    %c0_i32_103 = arith.constant 0 : i32
    %351 = arith.cmpi ne, %350, %c0_i32_103 : i32
    scf.if %351 {
      %c0_104 = arith.constant 0 : index
      %c0_105 = arith.constant 0 : index
      %352 = vector.load %arg4[%c0_104, %c0_105] : memref<8x1xf32, #tpu.memory_space<vmem>>, vector<8x1xf32>
      %c0_106 = arith.constant 0 : index
      %c0_107 = arith.constant 0 : index
      %353 = vector.load %arg21[%c0_106, %c0_107] : memref<8x32xf32, #tpu.memory_space<vmem>>, vector<8x32xf32>
      %354 = vector.broadcast %352 : vector<8x1xf32> to vector<8x32xf32>
      %355 = arith.mulf %353, %354 : vector<8x32xf32>
      %356 = arith.truncf %355 : vector<8x32xf32> to vector<8x32xbf16>
      %c0_108 = arith.constant 0 : index
      %c0_109 = arith.constant 0 : index
      %357 = vector.load %arg24[%c0_108, %c0_109] : memref<8x32xf32, #tpu.memory_space<vmem>>, vector<8x32xf32>
      %358 = vector.broadcast %352 : vector<8x1xf32> to vector<8x32xf32>
      %359 = arith.mulf %357, %358 : vector<8x32xf32>
      %360 = arith.truncf %359 : vector<8x32xf32> to vector<8x32xbf16>
      %c0_110 = arith.constant 0 : index
      %c0_111 = arith.constant 0 : index
      %361 = vector.load %arg11[%c0_110, %c0_111] : memref<32x32xbf16, #tpu.memory_space<vmem>>, vector<32x32xbf16>
      %cst_112 = arith.constant dense<0.000000e+00> : vector<8x32xf32>
      %362 = tpu.matmul %356, %361, %cst_112 {dimension_numbers = #tpu.dot_dimension_numbers<[1], [0], [0], [1], [0, 0, 1, 1], [], []>} : vector<8x32xbf16>, vector<32x32xbf16>, vector<8x32xf32> -> vector<8x32xf32>
      %c0_113 = arith.constant 0 : index
      %c0_114 = arith.constant 0 : index
      %363 = vector.load %arg12[%c0_113, %c0_114] : memref<32x32xbf16, #tpu.memory_space<vmem>>, vector<32x32xbf16>
      %cst_115 = arith.constant dense<0.000000e+00> : vector<8x32xf32>
      %364 = tpu.matmul %360, %363, %cst_115 {dimension_numbers = #tpu.dot_dimension_numbers<[1], [0], [0], [1], [0, 0, 1, 1], [], []>} : vector<8x32xbf16>, vector<32x32xbf16>, vector<8x32xf32> -> vector<8x32xf32>
      %365 = arith.addf %362, %364 : vector<8x32xf32>
      %c0_116 = arith.constant 0 : index
      %c0_117 = arith.constant 0 : index
      %366 = vector.load %arg13[%c0_116, %c0_117] : memref<1x32xf32, #tpu.memory_space<vmem>>, vector<1x32xf32>
      %367 = vector.broadcast %366 : vector<1x32xf32> to vector<8x32xf32>
      %368 = arith.addf %365, %367 : vector<8x32xf32>
      %cst_118 = arith.constant 0.000000e+00 : f32
      %369 = vector.broadcast %cst_118 : f32 to vector<8x32xf32>
      %370 = arith.maximumf %368, %369 : vector<8x32xf32>
      %371 = arith.truncf %370 : vector<8x32xf32> to vector<8x32xbf16>
      %c0_119 = arith.constant 0 : index
      %c0_120 = arith.constant 0 : index
      %372 = vector.load %arg14[%c0_119, %c0_120] : memref<32x128xbf16, #tpu.memory_space<vmem>>, vector<32x128xbf16>
      %cst_121 = arith.constant dense<0.000000e+00> : vector<8x128xf32>
      %373 = tpu.matmul %371, %372, %cst_121 {dimension_numbers = #tpu.dot_dimension_numbers<[1], [0], [0], [1], [0, 0, 1, 1], [], []>} : vector<8x32xbf16>, vector<32x128xbf16>, vector<8x128xf32> -> vector<8x128xf32>
      %c0_122 = arith.constant 0 : index
      %c0_123 = arith.constant 0 : index
      %374 = vector.load %arg15[%c0_122, %c0_123] : memref<1x128xf32, #tpu.memory_space<vmem>>, vector<1x128xf32>
      %375 = vector.broadcast %374 : vector<1x128xf32> to vector<8x128xf32>
      %376 = arith.addf %373, %375 : vector<8x128xf32>
      %c0_124 = arith.constant 0 : index
      %c0_125 = arith.constant 0 : index
      %377 = vector.load %arg16[%c0_124, %c0_125] : memref<8x128xf32, #tpu.memory_space<vmem>>, vector<8x128xf32>
      tpu.vector_store %arg16[%c0_124, %c0_125], %376 {strides = array<i32>} : memref<8x128xf32, #tpu.memory_space<vmem>>, vector<8x128xf32>,
    } else {
    }
    return
  }
  func.func @transform_0(%arg0: i32) -> (i32, i32) {
    %c0_i32 = arith.constant 0 : i32
    %c0_i32_0 = arith.constant 0 : i32
    return %arg0, %c0_i32 : i32, i32
  }
  func.func @transform_1(%arg0: i32) -> (i32, i32) {
    %c1_i32 = arith.constant 1 : i32
    %0 = arith.subi %c1_i32, %arg0 : i32
    %c0_i32 = arith.constant 0 : i32
    %c0_i32_0 = arith.constant 0 : i32
    return %0, %c0_i32 : i32, i32
  }
  func.func @transform_2(%arg0: i32) -> (i32, i32) {
    %c0_i32 = arith.constant 0 : i32
    %c0_i32_0 = arith.constant 0 : i32
    %c0_i32_1 = arith.constant 0 : i32
    return %c0_i32, %c0_i32_0 : i32, i32
  }
  func.func @transform_3(%arg0: i32) -> (i32, i32) {
    %c0_i32 = arith.constant 0 : i32
    %c0_i32_0 = arith.constant 0 : i32
    %c0_i32_1 = arith.constant 0 : i32
    return %c0_i32, %c0_i32_0 : i32, i32
  }
  func.func @transform_4(%arg0: i32) -> (i32, i32) {
    %c0_i32 = arith.constant 0 : i32
    %c0_i32_0 = arith.constant 0 : i32
    %c0_i32_1 = arith.constant 0 : i32
    return %c0_i32, %c0_i32_0 : i32, i32
  }
  func.func @transform_5(%arg0: i32) -> (i32, i32) {
    %c0_i32 = arith.constant 0 : i32
    %c0_i32_0 = arith.constant 0 : i32
    %c0_i32_1 = arith.constant 0 : i32
    return %c0_i32, %c0_i32_0 : i32, i32
  }
  func.func @transform_6(%arg0: i32) -> (i32, i32) {
    %c0_i32 = arith.constant 0 : i32
    %c0_i32_0 = arith.constant 0 : i32
    %c0_i32_1 = arith.constant 0 : i32
    return %c0_i32, %c0_i32_0 : i32, i32
  }
  func.func @transform_7(%arg0: i32) -> (i32, i32) {
    %c0_i32 = arith.constant 0 : i32
    %c0_i32_0 = arith.constant 0 : i32
    %c0_i32_1 = arith.constant 0 : i32
    return %c0_i32, %c0_i32_0 : i32, i32
  }
  func.func @transform_8(%arg0: i32) -> (i32, i32) {
    %c0_i32 = arith.constant 0 : i32
    %c0_i32_0 = arith.constant 0 : i32
    %c0_i32_1 = arith.constant 0 : i32
    return %c0_i32, %c0_i32_0 : i32, i32
  }
  func.func @transform_9(%arg0: i32) -> (i32, i32) {
    %c0_i32 = arith.constant 0 : i32
    %c0_i32_0 = arith.constant 0 : i32
    %c0_i32_1 = arith.constant 0 : i32
    return %c0_i32, %c0_i32_0 : i32, i32
  }
  func.func @transform_10(%arg0: i32) -> (i32, i32) {
    %c0_i32 = arith.constant 0 : i32
    %c0_i32_0 = arith.constant 0 : i32
    %c0_i32_1 = arith.constant 0 : i32
    return %c0_i32, %c0_i32_0 : i32, i32
  }
  func.func @transform_11(%arg0: i32) -> (i32, i32) {
    %c0_i32 = arith.constant 0 : i32
    %c0_i32_0 = arith.constant 0 : i32
    %c0_i32_1 = arith.constant 0 : i32
    return %c0_i32, %c0_i32_0 : i32, i32
  }
  func.func @transform_12(%arg0: i32) -> (i32, i32) {
    %c0_i32 = arith.constant 0 : i32
    %c0_i32_0 = arith.constant 0 : i32
    %c0_i32_1 = arith.constant 0 : i32
    return %c0_i32, %c0_i32_0 : i32, i32
  }
  func.func @transform_13(%arg0: i32) -> (i32, i32) {
    %c0_i32 = arith.constant 0 : i32
    %c0_i32_0 = arith.constant 0 : i32
    %c0_i32_1 = arith.constant 0 : i32
    return %c0_i32, %c0_i32_0 : i32, i32
  }
  func.func @transform_14(%arg0: i32) -> (i32, i32) {
    %c0_i32 = arith.constant 0 : i32
    %c0_i32_0 = arith.constant 0 : i32
    %c0_i32_1 = arith.constant 0 : i32
    return %c0_i32, %c0_i32_0 : i32, i32
  }
  func.func @transform_15(%arg0: i32) -> (i32, i32) {
    %c0_i32 = arith.constant 0 : i32
    %c0_i32_0 = arith.constant 0 : i32
    %c0_i32_1 = arith.constant 0 : i32
    return %c0_i32, %c0_i32_0 : i32, i32
  }
}

</mosaic_0001>

<bundles_post_ra>
// kernel: tpu_custom_call.1
= control target key start
LH: loop header
LB: loop body
LE: loop exit
PB: predicated region body
PF: predicated region fallthrough
CT: control target
= control target key end

     0   :  { %s2242_s0 = inlined_call_operand.vmem [shape: bf16[64,32], index: 0, kind: input, shape index: {}]   ;;  %s2243_s1 = inlined_call_operand.vmem [shape: bf16[64,32], index: 1, kind: input, shape index: {}]   ;;  %s2244_s2 = inlined_call_operand.vmem [shape: s32[8,1], index: 2, kind: input, shape index: {}]   ;;  %s2245_s3 = inlined_call_operand.vmem [shape: f32[8,1], index: 3, kind: input, shape index: {}]   ;;  %s2246_s4 = inlined_call_operand.vmem [shape: bf16[32,128], index: 4, kind: input, shape index: {}]   ;;  %s2247_s5 = inlined_call_operand.vmem [shape: bf16[32,128], index: 5, kind: input, shape index: {}]   ;;  %s2248_s6 = inlined_call_operand.vmem [shape: f32[1,128], index: 6, kind: input, shape index: {}]   ;;  %s2249_s7 = inlined_call_operand.vmem [shape: bf16[32,128], index: 7, kind: input, shape index: {}]   ;;  %s2250_s8 = inlined_call_operand.vmem [shape: bf16[32,128], index: 8, kind: input, shape index: {}]   ;;  %s2251_s9 = inlined_call_operand.vmem [shape: f32[1,128], index: 9, kind: input, shape index: {}]   ;;  %s2252_s10 = inlined_call_operand.vmem [shape: bf16[32,32], index: 10, kind: input, shape index: {}]   ;;  %s2253_s11 = inlined_call_operand.vmem [shape: bf16[32,32], index: 11, kind: input, shape index: {}]   ;;  %s2254_s12 = inlined_call_operand.vmem [shape: f32[1,32], index: 12, kind: input, shape index: {}]   ;;  %s2255_s13 = inlined_call_operand.vmem [shape: bf16[32,128], index: 13, kind: input, shape index: {}]   ;;  %s2256_s14 = inlined_call_operand.vmem [shape: f32[1,128], index: 14, kind: input, shape index: {}]   ;;  %s2257_s15 = inlined_call_operand.hbm [shape: f32[8,128], index: 15, kind: output, shape index: {}]  }
   0x1   :  { %2258 = sst [smem:[#allocation13_spill]] %s2242_s0 }
   0x2   :  { %20 = vsyncpa [#allocation11], 0  ;;  %s1864_s18 = smov 0  }
   0x3 LB: > { %s1870_s19 = sadd.s32 4294967295, %s1775_s18   ;;  %p1518_p0 = scmp.ge.s32.totalorder %s1775_s18, 1  ;;  %s1775_s18 = sphi %s1864_s18, %s26_s18  }
   0x4   : > { %p449_p1 = scmp.lt.s32.totalorder %s1775_s18, 3 }
   0x6   : > { %p450_p2 = pnand %p1518_p0, %p449_p1 }
   0x7   : > { %s1875_s20 = sshll.u32 (!%p450_p2), %s1870_s19, 2  ;;  %s504_s21 = ssub.s32 (!%p450_p2), 1, %s1870_s19 }
   0x8   : > { %453 = sbr.rel (%p450_p2) target bundleno = 2906 (0xb5a), region = 80  ;;  %p499_p3 = scmp.lt.s32.totalorder (!%p450_p2), %s1875_s20, 7 }
   0x9   : > { %s1879_s22 = sshll.u32 (!%p450_p2), %s504_s21, 2  ;;  %s2259_s0 = sld [smem:[#allocation13_spill]] (!%p450_p2) }
   0xa   : > { %p506_p4 = scmp.lt.s32.totalorder (!%p450_p2), %s1879_s22, 7  ;;  %p1523_p5 = scmp.ne.s32.totalorder (!%p450_p2), %s1870_s19, 0 }
   0xd   : > { %s500_s23 = scalar_select %p499_p3, %s1875_s20, 7 }
   0xe   : > { %s507_s24 = scalar_select %p506_p4, %s1879_s22, 7 }
   0xf   : > { %s1520_s25 = sshll.u32 %s500_s23, 2  ;;  %516 = sbr.rel (%p1523_p5) target bundleno = 28 (0x1c), region = 84 }
  0x10   : > { %s1887_s28 = scalar_lea.vmem %s2259_s0, %s1520_s25  ;;  %s1522_s29 = sshll.u32 %s507_s24, 2 }
  0x11   : > { %s1892_s17 = scalar_lea.vmem %s2243_s1, %s1522_s29 }
  0x14   : > { %vm517_vm0 = vcmask 261120   ;;  %v1777_v0 = vmov 0.0  }
  0x15   : > { %518 = vst.msk [vmem:[#allocation4] sm:$0xff] %vm517_vm0, %v1777_v0 }
  0x16   : > { %519 = vst.msk [vmem:[#allocation5] sm:$0xff] %vm517_vm0, %v1777_v0 }
  0x17   : > { %520 = vst.msk [vmem:[#allocation6] sm:$0xff] %vm517_vm0, %v1777_v0 }
  0x18   : > { %521 = vst.msk [vmem:[#allocation7] sm:$0xff] %vm517_vm0, %v1777_v0 }
  0x19   : > { %522 = vst.msk [vmem:[#allocation8] sm:$0xff] %vm517_vm0, %v1777_v0 }
  0x1a   : > { %523 = vst.msk [vmem:[#allocation9] sm:$0xff] %vm517_vm0, %v1777_v0 }
  0x1b   : > { %524 = vst [vmem:[#allocation10] sm:$0xff] %v1777_v0 }
  0x1c PF: > { %v1633_v1 = vld [vmem:[%s2249_s7 + $0x8] sm:$0xff]  ;;  %v1632_v4 = vld [vmem:[%s2249_s7] sm:$0xff]  ;;  %s1778_s26 = smov 32   ;;  %vm559_vm1 = vcmask 261120   ;;  %v661_v36 = vlaneseq  ;;  %s841_s25 = sadd.s32 3, %s1879_s22 }
  0x1d   : > { %v1635_v2 = vld [vmem:[%s2247_s5 + $0x8] sm:$0xff]  ;;  %635 = vmatpush.bf16.msra.mxu1 %v1633_v1  ;;  %v1634_v5 = vld [vmem:[%s2247_s5] sm:$0xff]  ;;  %s1781_s0 = smov 96   ;;  %s917_s27 = sadd.s32 1, %s1875_s20 }
  0x1e   : > { %v1629_v3 = vld [vmem:[%s2246_s4 + $0x8] sm:$0xff]  ;;  %698 = vmatpush.bf16.msra.mxu2 %v1635_v2  ;;  %v1910_v6 = vld [vmem:[#allocation4] sm:$0xff]  ;;  %v662_v42 = vand.u32 127, %v661_v36  ;;  %s994_s29 = sadd.s32 2, %s1879_s22  ;;  %s1147_s30 = sadd.s32 1, %s1879_s22 }
  0x1f   : > { %572 = vmatpush.bf16.msra.mxu0 %v1629_v3  ;;  %v1628_v7 = vld [vmem:[%s2246_s4] sm:$0xff]  ;;  %v1637_v8 = vld [vmem:[%s2250_s8 + $0x8] sm:$0xff]  ;;  %v676_v11 = vpack.c.bf16 %v1910_v6, %v1910_v6  ;;  %v672_v14 = vld [vmem:[#allocation7] sm:$0xff]  ;;  %s1223_s16 = sadd.s32 3, %s1875_s20  ;;  %p1594_p6 = scmp.ne.s32.totalorder %s1870_s19, 1 }
  0x20   : > { %v670_v9 = vld [vmem:[#allocation5] sm:$0xff]  ;;  %v1630_v10 = vld [vmem:[%s1892_s17] sm:$0xff]  ;;  %791 = vmatpush.bf16.msra.mxu3 %v1637_v8  ;;  %v769_v15 = vpack.c.bf16 %v672_v14, %v672_v14  ;;  %vm663_vm4 = vcmp.ge.s32.totalorder %v662_v42, 64  ;;  %vm664_vm5 = vcmp.lt.s32.totalorder %v662_v42, 96 }
  0x21   : > { %728 = vrot.lane.b32.xlu1 %v670_v9, %s1778_s26  ;;  %636 = vmatpush.bf16.msra.mxu1 %v1632_v4  ;;  %v1626_v12 = vld [vmem:[%s1887_s28] sm:$0xff]  ;;  %v1631_v17 = vld [vmem:[%s1892_s17 + $0x8] sm:$0xff]  ;;  %vm1948_vm8 = vmand %vm663_vm4, %vm664_vm5  ;;  %s1779_s17 = smov 64  }
  0x22   : > { %699 = vmatpush.bf16.msra.mxu2 %v1634_v5  ;;  %v1636_v13 = vld [vmem:[%s2250_s8] sm:$0xff] }
  0x23   : > { %573 = vmatpush.bf16.msra.mxu0 %v1628_v7  ;;  %v673_v16 = vld [vmem:[#allocation8] sm:$0xff] }
  0x24   : > { %1558 = vmatmul.msk.bf16.vlgmr.msra.gmra.mxu1 %vm559_vm1, %v1630_v10  ;;  %792 = vmatpush.bf16.msra.mxu3 %v1636_v13  ;;  %v1668_v18 = vld [vmem:[%s2251_s9] ss:$0 sm:$0xff] }
  0x25   : > { %1101 = vmatpush.bf16.msrb.mxu1 %v1637_v8  ;;  %1570 = vmatmul.msk.bf16.vlgmr.msra.gmra.mxu2 %vm559_vm1, %v676_v11  ;;  %v1939_v19 = vld [vmem:[%s2248_s6] ss:$0 sm:$0xff] }
  0x26   : > { %871 = vmatpush.bf16.msrb.mxu2 %v1635_v2  ;;  %1540 = vmatmul.msk.bf16.vlgmr.msra.gmra.mxu0 %vm559_vm1, %v1626_v12  ;;  %v1969_v11 = vld [vmem:[%s2244_s2] sm:$0xff]  ;;  %v748_v12 = vstv %s1875_s20 }
  0x27   : > { %1024 = vmatpush.bf16.msrb.mxu0 %v1635_v2  ;;  %1580 = vmatmul.msk.bf16.vlgmr.msra.gmra.mxu3 %vm559_vm1, %v769_v15  ;;  %vm749_vm13 = vcmp.lt.s32.totalorder %v748_v12, %v1969_v11 }
  0x28   : > { %948 = vmatpush.bf16.msrb.mxu3 %v1637_v8 }
  0x29   : > { %1102 = vmatpush.bf16.msrb.mxu1 %v1636_v13  ;;  %821 = vrot.lane.b32.xlu1 %v673_v16, %s1778_s26 }
  0x2a   : > { %872 = vmatpush.bf16.msrb.mxu2 %v1634_v5 }
  0x2b   : > { %1025 = vmatpush.bf16.msrb.mxu0 %v1634_v5 }
  0x2c   : > { %949 = vmatpush.bf16.msrb.mxu3 %v1636_v13 }
  0x2e   : > { %1177 = vmatpush.bf16.msra.mxu2 %v1635_v2 }
  0x30   : > { %1253 = vmatpush.bf16.msra.mxu3 %v1637_v8 }
  0x32   : > { %1178 = vmatpush.bf16.msra.mxu2 %v1634_v5  ;;  %v1780_v5 = vmov 0  }
  0x33   : > { %1665 = vset.pattern.permute.xlu2 %v1780_v5  ;;  %1666 = vset.pattern.permute.xlu0 %v1780_v5 }
  0x34   : > { %1254 = vmatpush.bf16.msra.mxu3 %v1636_v13  ;;  %1559 = vmatmul.msk.bf16.gmra.mxu1 %vm559_vm1, %v1631_v17  ;;  %v750_v13 = vsel %vm749_vm13, 1, %v1780_v5 }
  0x35   : > { %1667 = vset.pattern.permute.xlu1 %v1780_v5 }
  0x93   : > { %v1975_v14 = vpop.permute.xlu1 %728 }
  0xa1   : > { %v638_v20 = vpop.f32.mrf.mxu1 }
  0xa2   : > { %v1941_v21 = vadd.f32 %v1668_v18, %v638_v20  ;;  %v842_v20 = vstv %s841_s25 }
  0xa3   : > { %v575_v22 = vpop.f32.mrf.mxu0  ;;  %vm843_vm14 = vcmp.lt.s32.totalorder %v842_v20, %v1969_v11 }
  0xa4   : > { %v576_v23 = vadd.f32 %v1939_v19, %v575_v22  ;;  %v844_v22 = vsel %vm843_vm14, 1, %v1780_v5 }
  0xa8   : > { %v701_v24 = vpop.f32.mrf.mxu2 }
  0xa9   : > { %v705_v25 = vadd.f32 %v701_v24, %v576_v23  ;;  %v640_v26 = vpop.f32.mrf.mxu1  ;;  %v822_v23 = vpop.permute.xlu1 %821 }
  0xaa   : > { %v1944_v28 = vadd.f32 %v1668_v18, %v640_v26  ;;  %v794_v29 = vpop.f32.mrf.mxu3 }
  0xab   : > { %v1571_v27 = vmul.f32 -1.442695, %v705_v25  ;;  %v577_v42 = vpop.f32.mrf.mxu0 }
  0xad   : > { %1670 = vpow2.f32 %v1571_v27 }
  0xb0   : > { %v703_v30 = vpop.f32.mrf.mxu2 }
  0xb1   : > { %v643_v31 = vpop.f32.mrf.mxu1 }
  0xb2   : > { %v1946_v33 = vadd.f32 %v1668_v18, %v643_v31  ;;  %v796_v35 = vpop.f32.mrf.mxu3 }
  0xb3   : > { %v1671_v32 = vpop.eup %1670 }
  0xb4   : > { %v710_v34 = vadd.f32 1.0, %v1671_v32 }
  0xb6   : > { %1672 = vrcp.f32 %v710_v34  ;;  %vm716_vm2 = vweird.f32 %v710_v34  ;;  %v722_v43 = vand.u32 2147483648, %v710_v34  ;;  %v720_v46 = vand.u32 2147483647, %v710_v34 }
  0xb7   : > { %1674 = vtanh.f32 %v705_v25 }
  0xb8   : > { %v723_v48 = vor.u32 1.1754944e-38, %v722_v43  ;;  %vm721_vm7 = vcmp.eq.f32.partialorder %v720_v46, 8.507059e+37  ;;  %v578_v43 = vadd.f32 %v1939_v19, %v577_v42 }
  0xb9   : > { %v645_v37 = vpop.f32.mrf.mxu1 }
  0xba   : > { %v646_v38 = vadd.f32 %v1668_v18, %v645_v37 }
  0xbc   : > { %v1673_v39 = vpop.eup %1672  ;;  %v798_v41 = vadd.f32 %v794_v29, %v646_v38 }
  0xbd   : > { %v712_v40 = vmul.f32 %v1673_v39, %v710_v34  ;;  %vm717_vm3 = vweird.f32 %v1673_v39  ;;  %v1675_v52 = vpop.eup %1674 }
  0xbe   : > { %v1581_v45 = vmul.f32 -1.442695, %v798_v41  ;;  %vm718_vm6 = vmor %vm716_vm2, %vm717_vm3 }
  0xbf   : > { %v713_v44 = vsub.f32 1.0, %v712_v40 }
  0xc0   : > { %1676 = vpow2.f32 %v1581_v45 }
  0xc1   : > { %v714_v47 = vmul.f32 %v1673_v39, %v713_v44 }
  0xc3   : > { %v715_v49 = vadd.f32 %v1673_v39, %v714_v47 }
  0xc5   : > { %v719_v51 = vsel %vm718_vm6, %v1673_v39, %v715_v49 }
  0xc6   : > { %v724_v53 = vsel %vm721_vm7, %v723_v48, %v719_v51  ;;  %v1677_v54 = vpop.eup %1676 }
  0xc7   : > { %v1954_v55 = vsel %vm1948_vm8, %v1675_v52, %v724_v53  ;;  %v803_v56 = vadd.f32 1.0, %v1677_v54 }
  0xc8   : > { %733 = vrot.lane.b32.xlu0 %v1954_v55, %s1779_s17  ;;  %v731_v15 = vmul.f32 %v1975_v14, %v1954_v55 }
  0xc9   : > { %1678 = vrcp.f32 %v803_v56  ;;  %v815_v60 = vand.u32 2147483648, %v803_v56  ;;  %v813_v62 = vand.u32 2147483647, %v803_v56  ;;  %vm809_vm10 = vweird.f32 %v803_v56 }
  0xca   : > { %1680 = vtanh.f32 %v798_v41 }
  0xcb   : > { %v816_v0 = vor.u32 1.1754944e-38, %v815_v60  ;;  %vm814_vm12 = vcmp.eq.f32.partialorder %v813_v62, 8.507059e+37 }
  0xcf   : > { %v1679_v57 = vpop.eup %1678 }
  0xd0   : > { %v805_v58 = vmul.f32 %v1679_v57, %v803_v56  ;;  %vm810_vm9 = vweird.f32 %v1679_v57  ;;  %v1681_v2 = vpop.eup %1680 }
  0xd1   : > { %vm811_vm11 = vmor %vm809_vm10, %vm810_vm9 }
  0xd2   : > { %v806_v59 = vsub.f32 1.0, %v805_v58 }
  0xd4   : > { %v807_v61 = vmul.f32 %v1679_v57, %v806_v59 }
  0xd6   : > { %v808_v63 = vadd.f32 %v1679_v57, %v807_v61 }
  0xd8   : > { %v812_v1 = vsel %vm811_vm11, %v1679_v57, %v808_v63 }
  0xd9   : > { %v817_v3 = vsel %vm814_vm12, %v816_v0, %v812_v1 }
  0xda   : > { %v819_v4 = vsel %vm1948_vm8, %v1681_v2, %v817_v3 }
  0xdb   : > { %826 = vrot.lane.b32.xlu0 %v819_v4, %s1779_s17  ;;  %v824_v24 = vmul.f32 %v822_v23, %v819_v4 }
 0x13a   : > { %v734_v7 = vpop.permute.xlu0 %733 }
 0x13b   : > { %v736_v8 = vmul.f32 %v734_v7, %v1954_v55 }
 0x13d   : > { %738 = vrot.lane.b32.xlu2 %v736_v8, %s1778_s26 }
 0x14d   : > { %v827_v9 = vpop.permute.xlu0 %826 }
 0x14e   : > { %v829_v10 = vmul.f32 %v827_v9, %v819_v4 }
 0x150   : > { %831 = vrot.lane.b32.xlu2 %v829_v10, %s1778_s26 }
 0x158   : > { %752 = vperm.xlu2 %1665, %v750_v13  }
 0x197   : > { %v739_v16 = vpop.permute.xlu2 %738 }
 0x198   : > { %v1979_v17 = vadd.f32 %v739_v16, %v731_v15 }
 0x19a   : > { %1682 = vtanh.f32 %v1979_v17 }
 0x1a0   : > { %v1683_v18 = vpop.eup %1682 }
 0x1a1   : > { %744 = vrot.lane.b32.xlu0 %v1683_v18, %s1779_s17 }
 0x1a9   : > { %846 = vperm.xlu0 %1666, %v844_v22  }
 0x1aa   : > { %v832_v25 = vpop.permute.xlu2 %831 }
 0x1ab   : > { %v1986_v26 = vadd.f32 %v832_v25, %v824_v24 }
 0x1ad   : > { %1684 = vtanh.f32 %v1986_v26 }
 0x1b2   : > { %v2001_v36 = vpop.permute.xlu2 %752 }
 0x1b3   : > { %v1685_v27 = vpop.eup %1684  ;;  %vm754_vm0 = vcmp.eq.s32.totalorder %v2001_v36, 1 }
 0x1b4   : > { %837 = vrot.lane.b32.xlu1 %v1685_v27, %s1779_s17 }
 0x1bc   : > { %756 = vrot.lane.b32.xlu1 %v1910_v6, %s1781_s0 }
 0x213   : > { %v745_v29 = vpop.permute.xlu0 %744 }
 0x214   : > { %v2005_v6 = vmul.f32 %v745_v29, %v1954_v55  ;;  %v918_v29 = vstv %s917_s27 }
 0x215   : > { %vm919_vm11 = vcmp.lt.s32.totalorder %v918_v29, %v1969_v11 }
 0x21b   : > { %v1992_v30 = vpop.permute.xlu0 %846 }
 0x21c   : > { %vm848_vm15 = vcmp.eq.s32.totalorder %v1992_v30, 1 }
 0x226   : > { %v838_v31 = vpop.permute.xlu1 %837 }
 0x227   : > { %v840_v32 = vmul.f32 %v838_v31, %v819_v4  ;;  %v920_v31 = vsel %vm919_vm11, 1, %v1780_v5 }
 0x229   : > { %v1997_v34 = vsel %vm848_vm15, %v840_v32, 0.0  ;;  %v2035_v32 = vsel %vm754_vm0, %v1979_v17, %v1975_v14  ;;  %v850_v14 = vsel %vm848_vm15, %v1986_v26, 0.0 }
 0x22a   : > { %v935_v35 = vpack.c.bf16 %v1997_v34, %v1997_v34 }
 0x22c   : > { %937 = vrot.lane.b32.xlu1 %v935_v35, %s1778_s26 }
 0x22e   : > { %v757_v37 = vpop.permute.xlu1 %756 }
 0x22f   : > { %v2011_v38 = vsel %vm754_vm0, %v2005_v6, %v757_v37 }
 0x230   : > { %v858_v39 = vpack.c.bf16 %v2011_v38, %v2011_v38 }
 0x232   : > { %860 = vrot.lane.b32.xlu2 %v858_v39, %s1778_s26 }
 0x28c   : > { %v861_v40 = vpop.permute.xlu2 %860 }
 0x28d   : > { %1582 = vmatmul.msk.bf16.vlgmr.msrb.gmra.mxu2 %vm559_vm1, %v861_v40 }
 0x29e   : > { %v938_v41 = vpop.permute.xlu1 %937 }
 0x29f   : > { %1584 = vmatmul.msk.bf16.vlgmr.msrb.gmra.mxu3 %vm559_vm1, %v938_v41  ;;  %v995_v41 = vstv %s994_s29 }
 0x2a0   : > { %vm996_vm12 = vcmp.lt.s32.totalorder %v995_v41, %v1969_v11 }
 0x2a1   : > { %v997_v42 = vsel %vm996_vm12, 1, %v1780_v5 }
 0x310   : > { %v874_v44 = vpop.f32.mrf.mxu2 }
 0x311   : > { %v878_v45 = vadd.f32 %v874_v44, %v578_v43 }
 0x313   : > { %v1583_v46 = vmul.f32 -1.442695, %v878_v45 }
 0x315   : > { %1686 = vpow2.f32 %v1583_v46  ;;  %v1627_v46 = vld [vmem:[%s1887_s28 + $0x8] sm:$0xff]  ;;  %s1070_s28 = sadd.s32 2, %s1875_s20 }
 0x316   : > { %1541 = vmatmul.msk.bf16.gmra.mxu0 %vm559_vm1, %v1627_v46 }
 0x318   : > { %v876_v47 = vpop.f32.mrf.mxu2 }
 0x31b   : > { %v1687_v48 = vpop.eup %1686 }
 0x31c   : > { %v883_v49 = vadd.f32 1.0, %v1687_v48 }
 0x31e   : > { %1688 = vrcp.f32 %v883_v49  ;;  %v895_v57 = vand.u32 2147483648, %v883_v49  ;;  %v893_v59 = vand.u32 2147483647, %v883_v49  ;;  %vm889_vm3 = vweird.f32 %v883_v49 }
 0x320   : > { %v896_v62 = vor.u32 1.1754944e-38, %v895_v57  ;;  %vm894_vm5 = vcmp.eq.f32.partialorder %v893_v59, 8.507059e+37 }
 0x322   : > { %v951_v51 = vpop.f32.mrf.mxu3 }
 0x323   : > { %v955_v52 = vadd.f32 %v951_v51, %v1946_v33 }
 0x324   : > { %v1689_v53 = vpop.eup %1688 }
 0x325   : > { %v1585_v54 = vmul.f32 -1.442695, %v955_v52  ;;  %v885_v55 = vmul.f32 %v1689_v53, %v883_v49  ;;  %vm890_vm2 = vweird.f32 %v1689_v53 }
 0x326   : > { %vm891_vm4 = vmor %vm889_vm3, %vm890_vm2 }
 0x327   : > { %1690 = vpow2.f32 %v1585_v54  ;;  %v886_v56 = vsub.f32 1.0, %v885_v55 }
 0x328   : > { %1692 = vtanh.f32 %v878_v45 }
 0x329   : > { %v887_v58 = vmul.f32 %v1689_v53, %v886_v56 }
 0x32a   : > { %v953_v60 = vpop.f32.mrf.mxu3 }
 0x32b   : > { %v888_v61 = vadd.f32 %v1689_v53, %v887_v58 }
 0x32d   : > { %v1691_v63 = vpop.eup %1690  ;;  %v892_v0 = vsel %vm891_vm4, %v1689_v53, %v888_v61 }
 0x32e   : > { %v1693_v1 = vpop.eup %1692  ;;  %v960_v33 = vadd.f32 1.0, %v1691_v63  ;;  %v897_v2 = vsel %vm894_vm5, %v896_v62, %v892_v0 }
 0x32f   : > { %v899_v3 = vsel %vm1948_vm8, %v1693_v1, %v897_v2 }
 0x330   : > { %1694 = vrcp.f32 %v960_v33  ;;  %902 = vrot.lane.b32.xlu2 %v899_v3, %s1779_s17  ;;  %v972_v9 = vand.u32 2147483648, %v960_v33  ;;  %v970_v12 = vand.u32 2147483647, %v960_v33  ;;  %vm966_vm7 = vweird.f32 %v960_v33 }
 0x331   : > { %1696 = vtanh.f32 %v955_v52  ;;  %v900_v35 = vmul.f32 %v899_v3, %v2035_v32 }
 0x332   : > { %v973_v15 = vor.u32 1.1754944e-38, %v972_v9  ;;  %vm971_vm10 = vcmp.eq.f32.partialorder %v970_v12, 8.507059e+37 }
 0x336   : > { %v1695_v4 = vpop.eup %1694 }
 0x337   : > { %v962_v7 = vmul.f32 %v1695_v4, %v960_v33  ;;  %vm967_vm6 = vweird.f32 %v1695_v4  ;;  %v1697_v18 = vpop.eup %1696 }
 0x338   : > { %vm968_vm9 = vmor %vm966_vm7, %vm967_vm6 }
 0x339   : > { %v963_v8 = vsub.f32 1.0, %v962_v7 }
 0x33b   : > { %v964_v10 = vmul.f32 %v1695_v4, %v963_v8 }
 0x33d   : > { %v965_v13 = vadd.f32 %v1695_v4, %v964_v10 }
 0x33f   : > { %v969_v16 = vsel %vm968_vm9, %v1695_v4, %v965_v13 }
 0x340   : > { %v974_v20 = vsel %vm971_vm10, %v973_v15, %v969_v16 }
 0x341   : > { %v976_v22 = vsel %vm1948_vm8, %v1697_v18, %v974_v20 }
 0x342   : > { %979 = vrot.lane.b32.xlu0 %v976_v22, %s1779_s17  ;;  %v977_v17 = vmul.f32 %v976_v22, %v850_v14 }
 0x38a   : > { %v903_v23 = vpop.permute.xlu2 %902 }
 0x38b   : > { %v905_v24 = vmul.f32 %v903_v23, %v899_v3 }
 0x38d   : > { %907 = vrot.lane.b32.xlu1 %v905_v24, %s1778_s26 }
 0x393   : > { %v580_v57 = vpop.f32.mrf.mxu0 }
 0x394   : > { %v581_v62 = vadd.f32 %v1939_v19, %v580_v57 }
 0x39b   : > { %v2080_v58 = vpop.f32.mrf.mxu0 }
 0x3b4   : > { %v980_v25 = vpop.permute.xlu0 %979 }
 0x3b5   : > { %v982_v27 = vmul.f32 %v980_v25, %v976_v22 }
 0x3b7   : > { %984 = vrot.lane.b32.xlu2 %v982_v27, %s1778_s26 }
 0x3bf   : > { %922 = vperm.xlu2 %1665, %v920_v31  }
 0x3ff   : > { %v908_v37 = vpop.permute.xlu1 %907 }
 0x400   : > { %v2038_v39 = vadd.f32 %v908_v37, %v900_v35 }
 0x402   : > { %1698 = vtanh.f32 %v2038_v39 }
 0x408   : > { %v1699_v40 = vpop.eup %1698 }
 0x409   : > { %913 = vrot.lane.b32.xlu0 %v1699_v40, %s1779_s17 }
 0x411   : > { %v985_v43 = vpop.permute.xlu2 %984  ;;  %999 = vperm.xlu0 %1666, %v997_v42  }
 0x412   : > { %v2048_v44 = vadd.f32 %v985_v43, %v977_v17 }
 0x414   : > { %1700 = vtanh.f32 %v2048_v44 }
 0x419   : > { %v2054_v47 = vpop.permute.xlu2 %922 }
 0x41a   : > { %v1701_v45 = vpop.eup %1700  ;;  %vm924_vm13 = vcmp.eq.s32.totalorder %v2054_v47, 1 }
 0x41b   : > { %990 = vrot.lane.b32.xlu1 %v1701_v45, %s1779_s17 }
 0x47b   : > { %v914_v48 = vpop.permute.xlu0 %913 }
 0x47c   : > { %v2056_v49 = vmul.f32 %v914_v48, %v899_v3  ;;  %v1071_v48 = vstv %s1070_s28 }
 0x47d   : > { %vm1072_vm10 = vcmp.lt.s32.totalorder %v1071_v48, %v1969_v11 }
 0x47e   : > { %v2063_v26 = vsel %vm924_vm13, %v2056_v49, %v2011_v38 }
 0x47f   : > { %v1011_v30 = vpack.c.bf16 %v2063_v26, %v2063_v26 }
 0x481   : > { %1013 = vrot.lane.b32.xlu1 %v1011_v30, %s1778_s26 }
 0x483   : > { %v2068_v51 = vpop.permute.xlu0 %999 }
 0x484   : > { %vm1001_vm14 = vcmp.eq.s32.totalorder %v2068_v51, 1 }
 0x48d   : > { %v991_v52 = vpop.permute.xlu1 %990 }
 0x48e   : > { %v993_v53 = vmul.f32 %v991_v52, %v976_v22 }
 0x490   : > { %v2073_v54 = vsel %vm1001_vm14, %v993_v53, 0.0  ;;  %v1073_v53 = vsel %vm1072_vm10, 1, %v1780_v5 }
 0x491   : > { %v1088_v55 = vpack.c.bf16 %v2073_v54, %v2073_v54 }
 0x493   : > { %1090 = vrot.lane.b32.xlu2 %v1088_v55, %s1778_s26  ;;  %v2099_v55 = vsel %vm924_vm13, %v2038_v39, %v2035_v32  ;;  %v1003_v32 = vsel %vm1001_vm14, %v2048_v44, 0.0 }
 0x4ed   : > { %v1091_v38 = vpop.permute.xlu2 %1090 }
 0x4ee   : > { %1588 = vmatmul.msk.bf16.vlgmr.msrb.gmra.mxu1 %vm559_vm1, %v1091_v38 }
 0x4f3   : > { %v1014_v56 = vpop.permute.xlu1 %1013 }
 0x4f4   : > { %1586 = vmatmul.msk.bf16.vlgmr.msrb.gmra.mxu0 %vm559_vm1, %v1014_v56 }
 0x56b   : > { %v1104_v59 = vpop.f32.mrf.mxu1 }
 0x56c   : > { %v1108_v60 = vadd.f32 %v1104_v59, %v1944_v28 }
 0x56e   : > { %v1589_v61 = vmul.f32 -1.442695, %v1108_v60 }
 0x570   : > { %1702 = vpow2.f32 %v1589_v61 }
 0x571   : > { %v1027_v63 = vpop.f32.mrf.mxu0 }
 0x572   : > { %v1031_v0 = vadd.f32 %v1027_v63, %v581_v62 }
 0x573   : > { %v1106_v1 = vpop.f32.mrf.mxu1 }
 0x574   : > { %v1587_v33 = vmul.f32 -1.442695, %v1031_v0 }
 0x576   : > { %v1703_v2 = vpop.eup %1702  ;;  %1704 = vpow2.f32 %v1587_v33 }
 0x577   : > { %v1113_v3 = vadd.f32 1.0, %v1703_v2 }
 0x579   : > { %1706 = vrcp.f32 %v1113_v3  ;;  %v1029_v4 = vpop.f32.mrf.mxu0  ;;  %v1125_v28 = vand.u32 2147483648, %v1113_v3  ;;  %v1123_v15 = vand.u32 2147483647, %v1113_v3  ;;  %vm1119_vm2 = vweird.f32 %v1113_v3 }
 0x57b   : > { %v1126_v22 = vor.u32 1.1754944e-38, %v1125_v28  ;;  %vm1124_vm4 = vcmp.eq.f32.partialorder %v1123_v15, 8.507059e+37 }
 0x57c   : > { %v1705_v7 = vpop.eup %1704 }
 0x57d   : > { %v1036_v8 = vadd.f32 1.0, %v1705_v7 }
 0x57f   : > { %v1707_v9 = vpop.eup %1706  ;;  %1708 = vrcp.f32 %v1036_v8  ;;  %v1048_v29 = vand.u32 2147483648, %v1036_v8  ;;  %v1046_v37 = vand.u32 2147483647, %v1036_v8  ;;  %vm1042_vm6 = vweird.f32 %v1036_v8 }
 0x580   : > { %v1115_v10 = vmul.f32 %v1707_v9, %v1113_v3  ;;  %1710 = vtanh.f32 %v1108_v60  ;;  %vm1120_vm15 = vweird.f32 %v1707_v9  ;;  %v1148_v60 = vstv %s1147_s30 }
 0x581   : > { %vm1121_vm3 = vmor %vm1119_vm2, %vm1120_vm15  ;;  %1712 = vtanh.f32 %v1031_v0  ;;  %v1049_v41 = vor.u32 1.1754944e-38, %v1048_v29  ;;  %vm1047_vm9 = vcmp.eq.f32.partialorder %v1046_v37, 8.507059e+37  ;;  %vm1149_vm11 = vcmp.lt.s32.totalorder %v1148_v60, %v1969_v11 }
 0x582   : > { %v1116_v12 = vsub.f32 1.0, %v1115_v10  ;;  %v1150_v61 = vsel %vm1149_vm11, 1, %v1780_v5 }
 0x584   : > { %v1117_v13 = vmul.f32 %v1707_v9, %v1116_v12  ;;  %v583_v12 = vadd.f32 %v1939_v19, %v2080_v58 }
 0x585   : > { %v1709_v16 = vpop.eup %1708 }
 0x586   : > { %v1118_v18 = vadd.f32 %v1707_v9, %v1117_v13  ;;  %v1038_v20 = vmul.f32 %v1709_v16, %v1036_v8  ;;  %v1711_v25 = vpop.eup %1710  ;;  %vm1043_vm5 = vweird.f32 %v1709_v16 }
 0x587   : > { %vm1044_vm7 = vmor %vm1042_vm6, %vm1043_vm5  ;;  %v1713_v14 = vpop.eup %1712 }
 0x588   : > { %v1122_v23 = vsel %vm1121_vm3, %v1707_v9, %v1118_v18  ;;  %v1039_v24 = vsub.f32 1.0, %v1038_v20 }
 0x589   : > { %v1127_v27 = vsel %vm1124_vm4, %v1126_v22, %v1122_v23 }
 0x58a   : > { %v1129_v31 = vsel %vm1948_vm8, %v1711_v25, %v1127_v27  ;;  %v1040_v35 = vmul.f32 %v1709_v16, %v1039_v24 }
 0x58b   : > { %1132 = vrot.lane.b32.xlu1 %v1129_v31, %s1779_s17  ;;  %v1130_v39 = vmul.f32 %v1129_v31, %v1003_v32 }
 0x58c   : > { %v1041_v40 = vadd.f32 %v1709_v16, %v1040_v35 }
 0x58e   : > { %v1045_v42 = vsel %vm1044_vm7, %v1709_v16, %v1041_v40 }
 0x58f   : > { %v1050_v17 = vsel %vm1047_vm9, %v1049_v41, %v1045_v42 }
 0x590   : > { %v1052_v43 = vsel %vm1948_vm8, %v1713_v14, %v1050_v17 }
 0x591   : > { %1055 = vrot.lane.b32.xlu0 %v1052_v43, %s1779_s17  ;;  %v1053_v38 = vmul.f32 %v1052_v43, %v2099_v55 }
 0x5fd   : > { %v1133_v45 = vpop.permute.xlu1 %1132 }
 0x5fe   : > { %v1135_v46 = vmul.f32 %v1133_v45, %v1129_v31 }
 0x600   : > { %1137 = vrot.lane.b32.xlu0 %v1135_v46, %s1778_s26 }
 0x603   : > { %v1056_v30 = vpop.permute.xlu0 %1055 }
 0x604   : > { %v1058_v52 = vmul.f32 %v1056_v30, %v1052_v43 }
 0x606   : > { %1060 = vrot.lane.b32.xlu2 %v1058_v52, %s1778_s26 }
 0x608   : > { %1075 = vperm.xlu0 %1666, %v1073_v53  }
 0x660   : > { %v1061_v56 = vpop.permute.xlu2 %1060 }
 0x661   : > { %v2102_v57 = vadd.f32 %v1061_v56, %v1053_v38 }
 0x663   : > { %1714 = vtanh.f32 %v2102_v57 }
 0x669   : > { %v1715_v59 = vpop.eup %1714 }
 0x66a   : > { %1066 = vrot.lane.b32.xlu1 %v1715_v59, %s1779_s17 }
 0x672   : > { %1152 = vperm.xlu1 %1667, %v1150_v61   ;;  %v1138_v62 = vpop.permute.xlu0 %1137 }
 0x673   : > { %v2112_v63 = vadd.f32 %v1138_v62, %v1130_v39 }
 0x675   : > { %1716 = vtanh.f32 %v2112_v63 }
 0x67a   : > { %v2116_v1 = vpop.permute.xlu0 %1075 }
 0x67b   : > { %v1717_v0 = vpop.eup %1716  ;;  %vm1077_vm12 = vcmp.eq.s32.totalorder %v2116_v1, 1  ;;  %v927_v1 = vsel %vm924_vm13, %v2056_v49, 0.0 }
 0x67c   : > { %1143 = vrot.lane.b32.xlu2 %v1717_v0, %s1779_s17 }
 0x6d6   : > { %v1144_v3 = vpop.permute.xlu2 %1143 }
 0x6d7   : > { %v1146_v4 = vmul.f32 %v1144_v3, %v1129_v31 }
 0x6dc   : > { %v1067_v33 = vpop.permute.xlu1 %1066 }
 0x6dd   : > { %v2118_v2 = vmul.f32 %v1067_v33, %v1052_v43 }
 0x6df   : > { %v2125_v44 = vsel %vm1077_vm12, %v2118_v2, %v2063_v26  ;;  %v1080_v50 = vsel %vm1077_vm12, %v2118_v2, 0.0 }
 0x6e0   : > { %v1164_v51 = vpack.c.bf16 %v2125_v44, %v2125_v44 }
 0x6e2   : > { %1166 = vrot.lane.b32.xlu2 %v1164_v51, %s1778_s26  ;;  %v1224_v51 = vstv %s1223_s16 }
 0x6e3   : > { %vm1225_vm10 = vcmp.lt.s32.totalorder %v1224_v51, %v1969_v11 }
 0x6e4   : > { %v2130_v7 = vpop.permute.xlu1 %1152  ;;  %v1226_v3 = vsel %vm1225_vm10, 1, %v1780_v5 }
 0x6e5   : > { %vm1154_vm14 = vcmp.eq.s32.totalorder %v2130_v7, 1 }
 0x6e6   : > { %v2135_v8 = vsel %vm1154_vm14, %v1146_v4, 0.0  ;;  %v1079_v4 = vsel %vm1077_vm12, %v2102_v57, %v2099_v55 }
 0x6e7   : > { %v1240_v9 = vpack.c.bf16 %v2135_v8, %v2135_v8 }
 0x6e9   : > { %1242 = vrot.lane.b32.xlu0 %v1240_v9, %s1778_s26 }
 0x73c   : > { %v1167_v26 = vpop.permute.xlu2 %1166 }
 0x73d   : > { %1590 = vmatmul.msk.bf16.vlgmr.msra.gmra.mxu2 %vm559_vm1, %v1167_v26 }
 0x75b   : > { %v1243_v10 = vpop.permute.xlu0 %1242 }
 0x75c   : > { %1592 = vmatmul.msk.bf16.vlgmr.msra.gmra.mxu3 %vm559_vm1, %v1243_v10 }
 0x7c0   : > { %v1180_v28 = vpop.f32.mrf.mxu2 }
 0x7c1   : > { %v1184_v13 = vadd.f32 %v1180_v28, %v583_v12 }
 0x7c3   : > { %v1591_v15 = vmul.f32 -1.442695, %v1184_v13 }
 0x7c5   : > { %1718 = vpow2.f32 %v1591_v15  ;;  %v1299_v15 = vstv %s1879_s22 }
 0x7c8   : > { %v1182_v16 = vpop.f32.mrf.mxu2 }
 0x7cb   : > { %v1719_v18 = vpop.eup %1718 }
 0x7cc   : > { %v1189_v20 = vadd.f32 1.0, %v1719_v18 }
 0x7ce   : > { %1720 = vrcp.f32 %v1189_v20  ;;  %v1201_v25 = vand.u32 2147483648, %v1189_v20  ;;  %v1199_v29 = vand.u32 2147483647, %v1189_v20  ;;  %vm1195_vm2 = vweird.f32 %v1189_v20 }
 0x7cf   : > { %1722 = vtanh.f32 %v1184_v13 }
 0x7d0   : > { %v1202_v19 = vor.u32 1.1754944e-38, %v1201_v25  ;;  %vm1200_vm4 = vcmp.eq.f32.partialorder %v1199_v29, 8.507059e+37  ;;  %v671_v25 = vld [vmem:[#allocation6] sm:$0xff] }
 0x7d4   : > { %v1721_v22 = vpop.eup %1720 }
 0x7d5   : > { %v1191_v23 = vmul.f32 %v1721_v22, %v1189_v20  ;;  %vm1196_vm15 = vweird.f32 %v1721_v22  ;;  %v1723_v35 = vpop.eup %1722 }
 0x7d6   : > { %vm1197_vm3 = vmor %vm1195_vm2, %vm1196_vm15 }
 0x7d7   : > { %v1192_v24 = vsub.f32 1.0, %v1191_v23 }
 0x7d9   : > { %v1193_v27 = vmul.f32 %v1721_v22, %v1192_v24 }
 0x7db   : > { %v1194_v31 = vadd.f32 %v1721_v22, %v1193_v27 }
 0x7dd   : > { %v1198_v58 = vsel %vm1197_vm3, %v1721_v22, %v1194_v31 }
 0x7de   : > { %v1203_v37 = vsel %vm1200_vm4, %v1202_v19, %v1198_v58 }
 0x7df   : > { %v1256_v40 = vpop.f32.mrf.mxu3  ;;  %v2146_v41 = vsel %vm1948_vm8, %v1723_v35, %v1203_v37 }
 0x7e0   : > { %v1260_v42 = vadd.f32 %v1256_v40, %v1941_v21  ;;  %1208 = vrot.lane.b32.xlu1 %v2146_v41, %s1779_s17  ;;  %v1206_v9 = vmul.f32 %v2146_v41, %v1079_v4 }
 0x7e2   : > { %v1593_v14 = vmul.f32 -1.442695, %v1260_v42 }
 0x7e4   : > { %1724 = vpow2.f32 %v1593_v14 }
 0x7e7   : > { %v1258_v17 = vpop.f32.mrf.mxu3 }
 0x7ea   : > { %v1725_v43 = vpop.eup %1724 }
 0x7eb   : > { %v1265_v45 = vadd.f32 1.0, %v1725_v43 }
 0x7ed   : > { %1726 = vrcp.f32 %v1265_v45  ;;  %v1277_v52 = vand.u32 2147483648, %v1265_v45  ;;  %v1275_v38 = vand.u32 2147483647, %v1265_v45  ;;  %vm1271_vm6 = vweird.f32 %v1265_v45 }
 0x7ee   : > { %1728 = vtanh.f32 %v1260_v42 }
 0x7ef   : > { %v1278_v21 = vor.u32 1.1754944e-38, %v1277_v52  ;;  %vm1276_vm9 = vcmp.eq.f32.partialorder %v1275_v38, 8.507059e+37 }
 0x7f3   : > { %v1727_v46 = vpop.eup %1726 }
 0x7f4   : > { %v1267_v48 = vmul.f32 %v1727_v46, %v1265_v45  ;;  %vm1272_vm5 = vweird.f32 %v1727_v46  ;;  %v1729_v60 = vpop.eup %1728 }
 0x7f5   : > { %vm1273_vm7 = vmor %vm1271_vm6, %vm1272_vm5 }
 0x7f6   : > { %v1268_v30 = vsub.f32 1.0, %v1267_v48 }
 0x7f8   : > { %v1269_v53 = vmul.f32 %v1727_v46, %v1268_v30 }
 0x7fa   : > { %v1270_v56 = vadd.f32 %v1727_v46, %v1269_v53 }
 0x7fc   : > { %v1274_v59 = vsel %vm1273_vm7, %v1727_v46, %v1270_v56 }
 0x7fd   : > { %v1279_v61 = vsel %vm1276_vm9, %v1278_v21, %v1274_v59 }
 0x7fe   : > { %v1281_v32 = vsel %vm1948_vm8, %v1729_v60, %v1279_v61  ;;  %vm1300_vm8 = vcmp.lt.s32.totalorder %v1299_v15, %v1969_v11 }
 0x7ff   : > { %1284 = vrot.lane.b32.xlu2 %v1281_v32, %s1779_s17  ;;  %v1301_v55 = vsel %vm1300_vm8, 1, %v1780_v5 }
 0x852   : > { %v1209_v39 = vpop.permute.xlu1 %1208 }
 0x853   : > { %v1211_v62 = vmul.f32 %v1209_v39, %v2146_v41 }
 0x855   : > { %1213 = vrot.lane.b32.xlu0 %v1211_v62, %s1778_s26 }
 0x859   : > { %v1285_v0 = vpop.permute.xlu2 %1284 }
 0x85a   : > { %v1287_v33 = vmul.f32 %v1285_v0, %v1281_v32 }
 0x85c   : > { %1289 = vrot.lane.b32.xlu1 %v1287_v33, %s1778_s26 }
 0x864   : > { %1228 = vperm.xlu1 %1667, %v1226_v3  }
 0x86c   : > { %852 = vrot.lane.b32.xlu1 %v1997_v34, %s1778_s26  ;;  %v1156_v34 = vsel %vm1154_vm14, %v2112_v63, 0.0  ;;  %v761_v63 = vsel %vm754_vm0, %v2005_v6, 0.0 }
 0x86d   : > { %v1282_v12 = vmul.f32 %v1281_v32, %v1156_v34 }
 0x874   : > { %1082 = vrot.lane.b32.xlu1 %v1080_v50, %s1778_s26 }
 0x8c7   : > { %v1214_v26 = vpop.permute.xlu0 %1213 }
 0x8c8   : > { %v1216_v10 = vadd.f32 %v1214_v26, %v1206_v9 }
 0x8ca   : > { %1730 = vtanh.f32 %v1216_v10 }
 0x8ce   : > { %v1290_v28 = vpop.permute.xlu1 %1289 }
 0x8cf   : > { %v1292_v13 = vadd.f32 %v1290_v28, %v1282_v12 }
 0x8d0   : > { %v1731_v2 = vpop.eup %1730 }
 0x8d1   : > { %1732 = vtanh.f32 %v1292_v13  ;;  %1219 = vrot.lane.b32.xlu2 %v1731_v2, %s1779_s17 }
 0x8d6   : > { %v1229_v5 = vpop.permute.xlu1 %1228 }
 0x8d7   : > { %v1733_v57 = vpop.eup %1732  ;;  %vm1230_vm11 = vcmp.eq.s32.totalorder %v1229_v5, 1 }
 0x8d8   : > { %1295 = vrot.lane.b32.xlu0 %v1733_v57, %s1779_s17  ;;  %v1232_v47 = vsel %vm1230_vm11, %v1216_v10, %v1079_v4 }
 0x8d9   : > { %1303 = vperm.xlu2 %1665, %v1301_v55  }
 0x8de   : > { %v853_v24 = vpop.permute.xlu1 %852 }
 0x8e0   : > { %763 = vrot.lane.b32.xlu0 %v761_v63, %s1778_s26 }
 0x8e1   : > { %929 = vrot.lane.b32.xlu2 %v927_v1, %s1778_s26 }
 0x8e6   : > { %v1083_v19 = vpop.permute.xlu1 %1082 }
 0x8e8   : > { %1005 = vrot.lane.b32.xlu0 %v2073_v54, %s1778_s26 }
 0x8e9   : > { %1158 = vrot.lane.b32.xlu2 %v2135_v8, %s1778_s26 }
 0x92b   : > { %v1220_v11 = vpop.permute.xlu2 %1219 }
 0x92c   : > { %v1222_v7 = vmul.f32 %v1220_v11, %v2146_v41  ;;  %v674_v41 = vld [vmem:[#allocation9] sm:$0xff] }
 0x92d   : > { %v855_v42 = vadd.f32 %v853_v24, %v674_v41 }
 0x92e   : > { %v1233_v36 = vsel %vm1230_vm11, %v1222_v7, 0.0  ;;  %v1231_v6 = vsel %vm1230_vm11, %v1222_v7, %v2125_v44 }
 0x92f   : > { %1235 = vrot.lane.b32.xlu0 %v1233_v36, %s1778_s26  ;;  %1314 = vrot.lane.b32.xlu2 %v1231_v6, %s1778_s26 }
 0x933   : > { %v1304_v49 = vpop.permute.xlu2 %1303 }
 0x934   : > { %vm1305_vm0 = vcmp.eq.s32.totalorder %v1304_v49, 1 }
 0x935   : > { %v1307_v18 = vsel %vm1305_vm0, %v1292_v13, 0.0 }
 0x937   : > { %1319 = vrot.lane.b32.xlu0 %v1232_v47, %s1781_s0 }
 0x93b   : > { %v930_v20 = vpop.permute.xlu2 %929 }
 0x943   : > { %v1159_v22 = vpop.permute.xlu2 %1158 }
 0x94a   : > { %v1296_v54 = vpop.permute.xlu0 %1295 }
 0x94b   : > { %v1298_v16 = vmul.f32 %v1296_v54, %v1281_v32 }
 0x94d   : > { %v1306_v8 = vsel %vm1305_vm0, %v1298_v16, 0.0 }
 0x94e   : > { %1309 = vrot.lane.b32.xlu1 %v1306_v8, %s1778_s26 }
 0x952   : > { %v764_v23 = vpop.permute.xlu0 %763 }
 0x953   : > { %v766_v27 = vadd.f32 %v764_v23, %v671_v25 }
 0x955   : > { %v932_v31 = vadd.f32 %v930_v20, %v766_v27 }
 0x956   : > { %1326 = vrot.lane.b32.xlu1 %v1307_v18, %s1781_s0 }
 0x957   : > { %v1085_v58 = vadd.f32 %v1083_v19, %v932_v31 }
 0x95a   : > { %v1006_v29 = vpop.permute.xlu0 %1005 }
 0x95b   : > { %v1008_v14 = vadd.f32 %v1006_v29, %v855_v42 }
 0x95d   : > { %v1161_v17 = vadd.f32 %v1159_v22, %v1008_v14 }
 0x989   : > { %v1315_v44 = vpop.permute.xlu2 %1314 }
 0x98a   : > { %1317 = vst.msk [vmem:[#allocation4] sm:$0xff] %vm559_vm1, %v1315_v44 }
 0x9a1   : > { %v1236_v35 = vpop.permute.xlu0 %1235 }
 0x9a2   : > { %v1238_v37 = vadd.f32 %v1236_v35, %v1085_v58 }
 0x9a4   : > { %1323 = vst.msk [vmem:[#allocation6] sm:$0xff] %vm559_vm1, %v1238_v37 }
 0x9a9   : > { %v1320_v40 = vpop.permute.xlu0 %1319 }
 0x9aa   : > { %1322 = vst.msk [vmem:[#allocation5] sm:$0xff] %vm559_vm1, %v1320_v40 }
 0x9c0   : > { %v1310_v43 = vpop.permute.xlu1 %1309 }
 0x9c1   : > { %v1312_v45 = vadd.f32 %v1310_v43, %v1161_v17  ;;  %1324 = vst.msk [vmem:[#allocation7] sm:$0xff] %vm559_vm1, %v1310_v43 }
 0x9c3   : > { %1330 = vst.msk [vmem:[#allocation9] sm:$0xff] %vm559_vm1, %v1312_v45 }
 0x9c5   : > { %1334 = sbr.rel (%p1594_p6) target bundleno = 2901 (0xb55), region = 88 }
 0x9c8   : > { %v1327_v46 = vpop.permute.xlu1 %1326 }
 0x9c9   : > { %1329 = vst.msk [vmem:[#allocation8] sm:$0xff] %vm559_vm1, %v1327_v46 }
 0x9ca   : > { %v1335_v48 = vld [vmem:[%s2245_s3] sm:$0xff]  ;;  %v1641_v30 = vld [vmem:[%s2253_s11 + $0x8] sm:$0xff]  ;;  %v1782_v53 = vmov 0   ;;  %v1336_v21 = vld [vmem:[#allocation6] sm:$0xff] }
 0x9cb   : > { %v1639_v52 = vld [vmem:[%s2252_s10 + $0x8] sm:$0xff]  ;;  %1734 = vset.pattern.permute.xlu0 %v1782_v53  ;;  %1376 = vmatpush.bf16.msra.mxu0 %v1641_v30  ;;  %v1640_v38 = vld [vmem:[%s2253_s11] sm:$0xff] }
 0x9cc   : > { %1339 = vperm.xlu0 %1734, %v1335_v48   ;;  %1404 = vmatpush.bf16.msra.mxu1 %v1639_v52  ;;  %v1638_v56 = vld [vmem:[%s2252_s10] sm:$0xff]  ;;  %v1344_v59 = vld [vmem:[#allocation9] sm:$0xff] }
 0x9cd   : > { %v1643_v0 = vld [vmem:[%s2255_s13 + $0x8] sm:$0xff]  ;;  %v1642_v33 = vld [vmem:[%s2255_s13] sm:$0xff] }
 0x9ce   : > { %1447 = vmatpush.bf16.msra.mxu2 %v1643_v0  ;;  %v1735_v51 = vld [vmem:[%s2254_s12] ss:$0 sm:$0xff] }
 0x9cf   : > { %1377 = vmatpush.bf16.msra.mxu0 %v1640_v38  ;;  %v1736_v28 = vld [vmem:[%s2256_s14] ss:$0 sm:$0xff] }
 0x9d0   : > { %1405 = vmatpush.bf16.msra.mxu1 %v1638_v56 }
 0x9d2   : > { %1448 = vmatpush.bf16.msra.mxu2 %v1642_v33 }
 0xa3e   : > { %v1340_v60 = vpop.permute.xlu0 %1339 }
 0xa3f   : > { %v1342_v61 = vmul.f32 %v1340_v60, %v1336_v21  ;;  %v1345_v32 = vmul.f32 %v1344_v59, %v1340_v60 }
 0xa41   : > { %v1343_v39 = vpack.c.bf16 %v1342_v61, %v1342_v61  ;;  %v1346_v62 = vpack.c.bf16 %v1345_v32, %v1345_v32 }
 0xa43   : > { %1603 = vmatmul.msk.bf16.vlgmr.msra.gmra.mxu0 %vm559_vm1, %v1346_v62  ;;  %1612 = vmatmul.msk.bf16.vlgmr.msra.gmra.mxu1 %vm559_vm1, %v1343_v39 }
 0xac0   : > { %v1379_v3 = vpop.f32.mrf.mxu0  ;;  %v1407_v50 = vpop.f32.mrf.mxu1 }
 0xac1   : > { %v1408_v4 = vadd.f32 %v1407_v50, %v1379_v3 }
 0xac3   : > { %v1415_v9 = vadd.f32 %v1735_v51, %v1408_v4 }
 0xac5   : > { %v1416_v26 = vmax.f32 %v1415_v9, 0.0 }
 0xac7   : > { %v1417_v10 = vpack.c.bf16 %v1416_v26, %v1416_v26 }
 0xac8   : > { %v1381_v34 = vpop.f32.mrf.mxu0  ;;  %v1409_v12 = vpop.f32.mrf.mxu1 }
 0xac9   : > { %1621 = vmatmul.msk.bf16.vlgmr.msra.gmra.mxu2 %vm559_vm1, %v1417_v10 }
 0xb4c   : > { %v1450_v13 = vpop.f32.mrf.mxu2 }
 0xb4d   : > { %v1451_v2 = vadd.f32 %v1736_v28, %v1450_v13 }
 0xb4f   : > { %1454 = vst [vmem:[#allocation10] sm:$0xff] %v1451_v2 }
 0xb54   : > { %v1452_v15 = vpop.f32.mrf.mxu2 }
 0xb55 PF: > { %p1648_p7 = scmp.eq.s32.totalorder %s1870_s19, 1  ;;  %s1783_s17 = smov [#allocation10]  }
 0xb56   : > { %s1461_s23 = sshll.u32 %s1783_s17, 4  ;;  %s1463_s0 = sshll.u32 %s2257_s15, 4  ;;  %s1462_s23 = int_to_ptr.vmem [resolvable:$true] %s1461_s23  ;;  %s1464_s0 = int_to_ptr.hbm [resolvable:$true] %s1463_s0 }
 0xb57   : > { %1645 = dma.vmem_to_hbm [thread:$0]  (%p1648_p7), %s1462_s23, 128, %s1464_s0, [#allocation11]  }
 0xb58   : > { %1770 = dma.done.wait (%p1648_p7), [#allocation11], 128  }
 0xb59   : > { %1772 = vsyncadd (%p1648_p7), [#allocation11], 4294967168 }
 0xb5a PF: > { %s26_s18 = sadd.s32 1, %s1775_s18  }
 0xb5b   : > { %p23_p8 = scmp.ge.s32.totalorder %s26_s18, 4  }
 0xb5d   :  { %25 = sbr.rel (!%p23_p8) target bundleno = 3 (0x3), region = 124 }
 0xb62   :  { %1477 = vsyncpa [#allocation11], 1 }
 0xb63   :  { %1479 = vsyncpa [#allocation11 + $0x1], 1 }

</bundles_post_ra>
